<compile_context>
chip_gen: v7x
topology: tpu7x:2x2x1
jax: 0.10.0
libtpu: 0.0.40
codegen_flags: <defaults>
</compile_context>

<pallas_src>
import functools

import jax
import jax.numpy as jnp
from jax import lax
from jax.experimental import pallas as pl
from jax.experimental.pallas import tpu as pltpu


def _cldice_partial_kernel(x_ref, partner_ref, o_ref, *, W, num_iter):
    """Skeletonize every strip of this block; emit (sum(skel*partner), sum(skel))."""
    f32 = jnp.float32
    _, spb, H, SW = x_ref.shape            # block = (1, strips, H, strip_lanes)
    pinf = f32(jnp.inf)
    ninf = f32(-jnp.inf)

    # ---- neighbour-validity masks (int32-exact; hoisted out of all loops) ----
    # Rolls are circular; we roll an int32 iota with the same shifts as the data
    # and keep only positions whose rolled-in source index differs by exactly
    # +/-1 AND stays inside the same image -> direction-agnostic & leak-free.
    h_shifts = (1, H - 1)
    if H > 1:
        row = lax.broadcasted_iota(jnp.int32, (H, SW), 0)

        def _h_valid(s):
            d = pltpu.roll(row, s, 0) - row
            return (d == 1) | (d == -1)

        h_valid = (_h_valid(h_shifts[0]), _h_valid(h_shifts[1]))

    c_shifts = (1, SW - 1)
    if W > 1:
        col = lax.broadcasted_iota(jnp.int32, (H, SW), 1)
        w_in_img = col % W
        not_w_last = w_in_img != (W - 1)
        not_w_first = w_in_img != 0

        def _w_valid(s):
            d = pltpu.roll(col, s, 1) - col
            return ((d == 1) & not_w_last) | ((d == -1) & not_w_first)

        w_valid = (_w_valid(c_shifts[0]), _w_valid(c_shifts[1]))

    # ---- neighbour fetches (roll + boundary fill) -----------------------------
    def h_nbrs(v, fill):
        return (jnp.where(h_valid[0], pltpu.roll(v, h_shifts[0], 0), fill),
                jnp.where(h_valid[1], pltpu.roll(v, h_shifts[1], 0), fill))

    def w_nbrs(v, fill):
        return (jnp.where(w_valid[0], pltpu.roll(v, c_shifts[0], 1), fill),
                jnp.where(w_valid[1], pltpu.roll(v, c_shifts[1], 1), fill))

    def soft_erode(v):
        # min(-maxpool(-v,(3,1)), -maxpool(-v,(1,3))) == 5-point cross min;
        # computed as a balanced min tree (4 vmin instead of 5).
        if H == 1 and W == 1:
            return v
        if H == 1:
            l, r = w_nbrs(v, pinf)
            return jnp.minimum(v, jnp.minimum(l, r))
        if W == 1:
            u, d = h_nbrs(v, pinf)
            return jnp.minimum(v, jnp.minimum(u, d))
        u, d = h_nbrs(v, pinf)
        l, r = w_nbrs(v, pinf)
        return jnp.minimum(v, jnp.minimum(jnp.minimum(u, d), jnp.minimum(l, r)))

    def soft_dilate(v):
        # maxpool(v,(3,3),stride=1,pad=1) with implicit -inf padding, separable.
        if W > 1:
            l, r = w_nbrs(v, ninf)
            v = jnp.maximum(v, jnp.maximum(l, r))
        if H > 1:
            u, d = h_nbrs(v, ninf)
            v = jnp.maximum(v, jnp.maximum(u, d))
        return v

    def relu(v):
        return jnp.maximum(v, f32(0.0))

    # ---- soft skeleton + partial sums for one (H, SW) strip -------------------
    # Loop carries e = soft_erode(img); each iteration: img = e_prev,
    # e = soft_erode(img), open = soft_dilate(e)  -> 1 erode + 1 dilate / iter.
    def strip_sums(x, read_partner):
        e = soft_erode(x)
        skel = relu(x - soft_dilate(e))

        def body(_, carry):
            e_prev, sk = carry
            img = e_prev                      # == soft_erode(previous img)
            e_new = soft_erode(img)
            delta = relu(img - soft_dilate(e_new))
            sk = sk + relu(delta - sk * delta)
            return (e_new, sk)

        _, skel = lax.fori_loop(0, num_iter, body, (e, skel), unroll=True)

        partner = read_partner()              # deferred: not live across the loop
        num = jnp.sum(skel * partner, keepdims=True)   # (1, 1)
        den = jnp.sum(skel, keepdims=True)             # (1, 1)
        return num, den

    if spb == 1:
        num, den = strip_sums(x_ref[0, 0], lambda: partner_ref[0, 0])
    else:
        def strip_body(si, carry):
            na, da = carry
            n, d = strip_sums(x_ref[0, si], lambda: partner_ref[0, si])
            return (na + n, da + d)

        zero = jnp.zeros((1, 1), f32)
        num, den = lax.fori_loop(0, spb, strip_body, (zero, zero))

    # ---- write the two partial sums into a lane-dense (8,128) output tile ----
    sub = lax.broadcasted_iota(jnp.int32, (1, 1, 8, 128), 2)
    lane = lax.broadcasted_iota(jnp.int32, (1, 1, 8, 128), 3)
    first = sub == 0
    o_ref[...] = jnp.where(first & (lane == 0), num,
                           jnp.where(first & (lane == 1), den, f32(0.0)))


def _pick_tiling(n_img, H, W):
    """Choose (ips, spb): images per lane-strip and strips per grid block.

    The strip (H, ips*W) is the compute working set (bounded so live f32
    intermediates stay near the 64-vreg file); the block of `spb` strips is the
    DMA tile (large, to amortize per-grid-step overhead)."""
    divs = [d for d in range(1, n_img + 1) if n_img % d == 0]
    # target <= ~8K f32 elements per strip, lane width >= 128 when W allows it
    hh = max(H, 8)
    lane_target = max(128, min(1024, (8192 + hh - 1) // hh))
    cand = [d for d in divs if d * W <= lane_target]
    ips = max(cand) if cand else 1
    sw = ips * W
    s_total = n_img // ips
    # DMA tile: <= ~2 MiB per input buffer (x2 inputs x2 pipeline buffers <= 8 MiB)
    max_spb = max(1, (2 * 1024 * 1024) // (H * sw * 4))
    spb = max(d for d in range(1, s_total + 1)
              if s_total % d == 0 and d <= max_spb)
    return ips, spb


def _vmem_limit_bytes():
    """VMEM budget: generous on v5e/v6e (128 MiB), capped for v7x (64 MiB)."""
    try:
        cap = pltpu.get_tpu_info().vmem_capacity_bytes
    except Exception:
        return 32 * 1024 * 1024
    return int(max(32 * 1024 * 1024, min(cap - 16 * 1024 * 1024, 64 * 1024 * 1024)))


def soft_cldice(y_true, y_pred, *, iter_=3, smooth=1.0,
                exclude_background=False, skeleton_iters=10):
    # `iter_` kept for API parity with the PyTorch module; its forward pass uses
    # SoftSkeletonize(num_iter=10), so the skeleton loop count is fixed at 10.
    del iter_
    if exclude_background:
        y_true = y_true[:, 1:, :, :]
        y_pred = y_pred[:, 1:, :, :]

    y_true = y_true.astype(jnp.float32)
    y_pred = y_pred.astype(jnp.float32)
    B, C, H, W = y_true.shape
    n_img = B * C

    ips, spb = _pick_tiling(n_img, H, W)
    sw = ips * W
    s_total = n_img // ips
    n_blocks = s_total // spb

    # Lane-dense strips: (B,C,H,W) -> (s_total, H, ips*W). W stays innermost on
    # lanes (col % W masks stop cross-image leakage), H on sublanes.
    def to_strips(a):
        a = a.reshape(s_total, ips, H, W)
        a = jnp.transpose(a, (0, 2, 1, 3))
        return a.reshape(s_total, H, sw)

    # slab 0 = pred, slab 1 = true; both run one skeleton code path and each
    # sees the other as "partner" for the skel*other numerator.
    x_all = jnp.stack([to_strips(y_pred), to_strips(y_true)], axis=0)

    kernel = functools.partial(_cldice_partial_kernel, W=W,
                               num_iter=skeleton_iters)
    partials = pl.pallas_call(
        kernel,
        out_shape=jax.ShapeDtypeStruct((2, n_blocks, 8, 128), jnp.float32),
        grid=(2, n_blocks),
        in_specs=[
            pl.BlockSpec((1, spb, H, sw), lambda s, j: (s, j, 0, 0)),      # own
            pl.BlockSpec((1, spb, H, sw), lambda s, j: (1 - s, j, 0, 0)),  # partner
        ],
        out_specs=pl.BlockSpec((1, 1, 8, 128), lambda s, j: (s, j, 0, 0)),
        compiler_params=pltpu.CompilerParams(
            dimension_semantics=("parallel", "parallel"),
            vmem_limit_bytes=_vmem_limit_bytes(),
        ),
    )(x_all, x_all)

    # tiny XLA epilogue: combine per-block partials into the clDice scalar
    nums = jnp.sum(partials[:, :, 0, 0], axis=1)   # [sum(skel_p*y_t), sum(skel_t*y_p)]
    dens = jnp.sum(partials[:, :, 0, 1], axis=1)   # [sum(skel_p),     sum(skel_t)]
    sm = jnp.float32(smooth)
    tprec = (nums[0] + sm) / (dens[0] + sm)
    tsens = (nums[1] + sm) / (dens[1] + sm)
    return 1.0 - 2.0 * (tprec * tsens) / (tprec + tsens)


# ---------------- pure-JAX reference (mirrors the PyTorch module) -------------
def _ref_soft_erode(img):
    def minpool(x, window, pad):
        return lax.reduce_window(x, jnp.inf, lax.min, (1, 1) + window,
                                 (1, 1, 1, 1), ((0, 0), (0, 0)) + pad)
    p1 = minpool(img, (3, 1), ((1, 1), (0, 0)))
    p2 = minpool(img, (1, 3), ((0, 0), (1, 1)))
    return jnp.minimum(p1, p2)


def _ref_soft_dilate(img):
    return lax.reduce_window(img, -jnp.inf, lax.max, (1, 1, 3, 3),
                             (1, 1, 1, 1), ((0, 0), (0, 0), (1, 1), (1, 1)))


def _ref_soft_cldice(y_true, y_pred, smooth=1.0, num_iter=10):
    def soft_skel(img):
        skel = jax.nn.relu(img - _ref_soft_dilate(_ref_soft_erode(img)))
        for _ in range(num_iter):
            img = _ref_soft_erode(img)
            delta = jax.nn.relu(img - _ref_soft_dilate(_ref_soft_erode(img)))
            skel = skel + jax.nn.relu(delta - skel * delta)
        return skel
    sp, st = soft_skel(y_pred), soft_skel(y_true)
    tprec = (jnp.sum(sp * y_true) + smooth) / (jnp.sum(sp) + smooth)
    tsens = (jnp.sum(st * y_pred) + smooth) / (jnp.sum(st) + smooth)
    return 1.0 - 2.0 * (tprec * tsens) / (tprec + tsens)


if __name__ == "__main__":
    def run_case(seed, B, C, H, W):
        k1, k2 = jax.random.split(jax.random.PRNGKey(seed))
        y_true = (jax.random.uniform(k1, (B, C, H, W)) > 0.5).astype(jnp.float32)
        y_pred = jax.random.uniform(k2, (B, C, H, W), dtype=jnp.float32)
        loss = jax.block_until_ready(soft_cldice(y_true, y_pred))
        ref = jax.block_until_ready(_ref_soft_cldice(y_true, y_pred))
        assert loss.shape == () and loss.dtype == jnp.float32
        assert bool(jnp.isfinite(loss))
        assert bool(jnp.allclose(loss, ref, rtol=1e-4, atol=1e-4)), (float(loss), float(ref))
        return loss

    run_case(0, 2, 4, 16, 16)     # single-strip-per-block path
    run_case(1, 2, 4, 16, 128)    # multi-strip (in-kernel strip loop) path
    print("KERNEL_OK")
</pallas_src>

<mosaic_0001>
module attributes {stable_mosaic.version = 11 : i64} {
  func.func @_cldice_partial_kernel(%arg0: i32, %arg1: i32, %arg2: memref<1x1x16x128xf32, #tpu.memory_space<vmem>>, %arg3: memref<1x1x16x128xf32, #tpu.memory_space<vmem>>, %arg4: memref<1x1x8x128xf32, #tpu.memory_space<vmem>>) attributes {dimension_semantics = [#tpu.dimension_semantics<parallel>, #tpu.dimension_semantics<parallel>], iteration_bounds = array<i64: 2, 1>, scalar_prefetch = 0 : i64, scratch_operands = 0 : i64, tpu.core_type = #tpu.core_type<tc>, window_params = [{transform_indices = @transform_0, window_bounds = array<i64: 1, 1, 16, 128>}, {transform_indices = @transform_1, window_bounds = array<i64: 1, 1, 16, 128>}, {transform_indices = @transform_2, window_bounds = array<i64: 1, 1, 8, 128>}]} {
    %0 = tpu.iota {dimensions = array<i32: 0>} : vector<16x128xi32>
    %c1_i32 = arith.constant 1 : i32
    %1 = tpu.dynamic_rotate %0 by %c1_i32 dim 0 : vector<16x128xi32>, i32 -> vector<16x128xi32>
    %2 = arith.subi %1, %0 : vector<16x128xi32>
    %c1_i32_0 = arith.constant 1 : i32
    %3 = vector.broadcast %c1_i32_0 : i32 to vector<16x128xi32>
    %4 = arith.cmpi eq, %2, %3 : vector<16x128xi32>
    %c-1_i32 = arith.constant -1 : i32
    %5 = vector.broadcast %c-1_i32 : i32 to vector<16x128xi32>
    %6 = arith.cmpi eq, %2, %5 : vector<16x128xi32>
    %7 = arith.ori %4, %6 : vector<16x128xi1>
    %c15_i32 = arith.constant 15 : i32
    %8 = tpu.dynamic_rotate %0 by %c15_i32 dim 0 : vector<16x128xi32>, i32 -> vector<16x128xi32>
    %9 = arith.subi %8, %0 : vector<16x128xi32>
    %c1_i32_1 = arith.constant 1 : i32
    %10 = vector.broadcast %c1_i32_1 : i32 to vector<16x128xi32>
    %11 = arith.cmpi eq, %9, %10 : vector<16x128xi32>
    %c-1_i32_2 = arith.constant -1 : i32
    %12 = vector.broadcast %c-1_i32_2 : i32 to vector<16x128xi32>
    %13 = arith.cmpi eq, %9, %12 : vector<16x128xi32>
    %14 = arith.ori %11, %13 : vector<16x128xi1>
    %15 = tpu.iota {dimensions = array<i32: 1>} : vector<16x128xi32>
    %c16_i32 = arith.constant 16 : i32
    %c0_i32 = arith.constant 0 : i32
    %16 = arith.cmpi eq, %c16_i32, %c0_i32 : i32
    %c1_i32_3 = arith.constant 1 : i32
    %17 = arith.select %16, %c1_i32_3, %c16_i32 : i32
    %18 = vector.broadcast %17 : i32 to vector<16x128xi32>
    %19 = arith.remsi %15, %18 : vector<16x128xi32>
    %c0_i32_4 = arith.constant 0 : i32
    %20 = vector.broadcast %c0_i32_4 : i32 to vector<16x128xi32>
    %21 = arith.cmpi ne, %19, %20 : vector<16x128xi32>
    %c0_i32_5 = arith.constant 0 : i32
    %22 = vector.broadcast %c0_i32_5 : i32 to vector<16x128xi32>
    %23 = arith.cmpi slt, %19, %22 : vector<16x128xi32>
    %c0_i32_6 = arith.constant 0 : i32
    %24 = arith.cmpi slt, %17, %c0_i32_6 : i32
    %25 = vector.broadcast %24 : i1 to vector<16x128xi1>
    %26 = vector.broadcast %25 : vector<16x128xi1> to vector<16x128xi1>
    %27 = arith.xori %23, %26 : vector<16x128xi1>
    %28 = arith.andi %27, %21 : vector<16x128xi1>
    %29 = vector.broadcast %17 : i32 to vector<16x128xi32>
    %30 = arith.addi %19, %29 : vector<16x128xi32>
    %31 = arith.select %28, %30, %19 : vector<16x128xi1>, vector<16x128xi32>
    %c15_i32_7 = arith.constant 15 : i32
    %32 = vector.broadcast %c15_i32_7 : i32 to vector<16x128xi32>
    %33 = arith.cmpi ne, %31, %32 : vector<16x128xi32>
    %c0_i32_8 = arith.constant 0 : i32
    %34 = vector.broadcast %c0_i32_8 : i32 to vector<16x128xi32>
    %35 = arith.cmpi ne, %31, %34 : vector<16x128xi32>
    %c1_i32_9 = arith.constant 1 : i32
    %36 = tpu.dynamic_rotate %15 by %c1_i32_9 dim 1 : vector<16x128xi32>, i32 -> vector<16x128xi32>
    %37 = arith.subi %36, %15 : vector<16x128xi32>
    %c1_i32_10 = arith.constant 1 : i32
    %38 = vector.broadcast %c1_i32_10 : i32 to vector<16x128xi32>
    %39 = arith.cmpi eq, %37, %38 : vector<16x128xi32>
    %40 = arith.andi %39, %33 : vector<16x128xi1>
    %c-1_i32_11 = arith.constant -1 : i32
    %41 = vector.broadcast %c-1_i32_11 : i32 to vector<16x128xi32>
    %42 = arith.cmpi eq, %37, %41 : vector<16x128xi32>
    %43 = arith.andi %42, %35 : vector<16x128xi1>
    %44 = arith.ori %40, %43 : vector<16x128xi1>
    %c127_i32 = arith.constant 127 : i32
    %45 = tpu.dynamic_rotate %15 by %c127_i32 dim 1 : vector<16x128xi32>, i32 -> vector<16x128xi32>
    %46 = arith.subi %45, %15 : vector<16x128xi32>
    %c1_i32_12 = arith.constant 1 : i32
    %47 = vector.broadcast %c1_i32_12 : i32 to vector<16x128xi32>
    %48 = arith.cmpi eq, %46, %47 : vector<16x128xi32>
    %49 = arith.andi %48, %33 : vector<16x128xi1>
    %c-1_i32_13 = arith.constant -1 : i32
    %50 = vector.broadcast %c-1_i32_13 : i32 to vector<16x128xi32>
    %51 = arith.cmpi eq, %46, %50 : vector<16x128xi32>
    %52 = arith.andi %51, %35 : vector<16x128xi1>
    %53 = arith.ori %49, %52 : vector<16x128xi1>
    %c0 = arith.constant 0 : index
    %c0_14 = arith.constant 0 : index
    %c0_15 = arith.constant 0 : index
    %c0_16 = arith.constant 0 : index
    %54 = vector.load %arg2[%c0, %c0_14, %c0_15, %c0_16] : memref<1x1x16x128xf32, #tpu.memory_space<vmem>>, vector<1x1x16x128xf32>
    %55 = vector.shape_cast %54 : vector<1x1x16x128xf32> to vector<16x128xf32>
    %c1_i32_17 = arith.constant 1 : i32
    %56 = tpu.dynamic_rotate %55 by %c1_i32_17 dim 0 : vector<16x128xf32>, i32 -> vector<16x128xf32>
    %cst = arith.constant 0x7F800000 : f32
    %57 = vector.broadcast %cst : f32 to vector<16x128xf32>
    %58 = arith.select %7, %56, %57 : vector<16x128xi1>, vector<16x128xf32>
    %c15_i32_18 = arith.constant 15 : i32
    %59 = tpu.dynamic_rotate %55 by %c15_i32_18 dim 0 : vector<16x128xf32>, i32 -> vector<16x128xf32>
    %cst_19 = arith.constant 0x7F800000 : f32
    %60 = vector.broadcast %cst_19 : f32 to vector<16x128xf32>
    %61 = arith.select %14, %59, %60 : vector<16x128xi1>, vector<16x128xf32>
    %c1_i32_20 = arith.constant 1 : i32
    %62 = tpu.dynamic_rotate %55 by %c1_i32_20 dim 1 : vector<16x128xf32>, i32 -> vector<16x128xf32>
    %cst_21 = arith.constant 0x7F800000 : f32
    %63 = vector.broadcast %cst_21 : f32 to vector<16x128xf32>
    %64 = arith.select %44, %62, %63 : vector<16x128xi1>, vector<16x128xf32>
    %c127_i32_22 = arith.constant 127 : i32
    %65 = tpu.dynamic_rotate %55 by %c127_i32_22 dim 1 : vector<16x128xf32>, i32 -> vector<16x128xf32>
    %cst_23 = arith.constant 0x7F800000 : f32
    %66 = vector.broadcast %cst_23 : f32 to vector<16x128xf32>
    %67 = arith.select %53, %65, %66 : vector<16x128xi1>, vector<16x128xf32>
    %68 = arith.minimumf %58, %61 : vector<16x128xf32>
    %69 = arith.minimumf %64, %67 : vector<16x128xf32>
    %70 = arith.minimumf %68, %69 : vector<16x128xf32>
    %71 = arith.minimumf %55, %70 : vector<16x128xf32>
    %c1_i32_24 = arith.constant 1 : i32
    %72 = tpu.dynamic_rotate %71 by %c1_i32_24 dim 1 : vector<16x128xf32>, i32 -> vector<16x128xf32>
    %cst_25 = arith.constant 0xFF800000 : f32
    %73 = vector.broadcast %cst_25 : f32 to vector<16x128xf32>
    %74 = arith.select %44, %72, %73 : vector<16x128xi1>, vector<16x128xf32>
    %c127_i32_26 = arith.constant 127 : i32
    %75 = tpu.dynamic_rotate %71 by %c127_i32_26 dim 1 : vector<16x128xf32>, i32 -> vector<16x128xf32>
    %cst_27 = arith.constant 0xFF800000 : f32
    %76 = vector.broadcast %cst_27 : f32 to vector<16x128xf32>
    %77 = arith.select %53, %75, %76 : vector<16x128xi1>, vector<16x128xf32>
    %78 = arith.maximumf %74, %77 : vector<16x128xf32>
    %79 = arith.maximumf %71, %78 : vector<16x128xf32>
    %c1_i32_28 = arith.constant 1 : i32
    %80 = tpu.dynamic_rotate %79 by %c1_i32_28 dim 0 : vector<16x128xf32>, i32 -> vector<16x128xf32>
    %cst_29 = arith.constant 0xFF800000 : f32
    %81 = vector.broadcast %cst_29 : f32 to vector<16x128xf32>
    %82 = arith.select %7, %80, %81 : vector<16x128xi1>, vector<16x128xf32>
    %c15_i32_30 = arith.constant 15 : i32
    %83 = tpu.dynamic_rotate %79 by %c15_i32_30 dim 0 : vector<16x128xf32>, i32 -> vector<16x128xf32>
    %cst_31 = arith.constant 0xFF800000 : f32
    %84 = vector.broadcast %cst_31 : f32 to vector<16x128xf32>
    %85 = arith.select %14, %83, %84 : vector<16x128xi1>, vector<16x128xf32>
    %86 = arith.maximumf %82, %85 : vector<16x128xf32>
    %87 = arith.maximumf %79, %86 : vector<16x128xf32>
    %88 = arith.subf %55, %87 : vector<16x128xf32>
    %cst_32 = arith.constant 0.000000e+00 : f32
    %89 = vector.broadcast %cst_32 : f32 to vector<16x128xf32>
    %90 = arith.maximumf %88, %89 : vector<16x128xf32>
    %cst_33 = arith.constant 0x7F800000 : f32
    %cst_34 = arith.constant 0xFF800000 : f32
    %c0_i32_35 = arith.constant 0 : i32
    %c1_i32_36 = arith.constant 1 : i32
    %91 = tpu.dynamic_rotate %71 by %c1_i32_36 dim 0 : vector<16x128xf32>, i32 -> vector<16x128xf32>
    %92 = vector.broadcast %cst_33 : f32 to vector<16x128xf32>
    %93 = arith.select %7, %91, %92 : vector<16x128xi1>, vector<16x128xf32>
    %c15_i32_37 = arith.constant 15 : i32
    %94 = tpu.dynamic_rotate %71 by %c15_i32_37 dim 0 : vector<16x128xf32>, i32 -> vector<16x128xf32>
    %95 = vector.broadcast %cst_33 : f32 to vector<16x128xf32>
    %96 = arith.select %14, %94, %95 : vector<16x128xi1>, vector<16x128xf32>
    %c1_i32_38 = arith.constant 1 : i32
    %97 = tpu.dynamic_rotate %71 by %c1_i32_38 dim 1 : vector<16x128xf32>, i32 -> vector<16x128xf32>
    %98 = vector.broadcast %cst_33 : f32 to vector<16x128xf32>
    %99 = arith.select %44, %97, %98 : vector<16x128xi1>, vector<16x128xf32>
    %c127_i32_39 = arith.constant 127 : i32
    %100 = tpu.dynamic_rotate %71 by %c127_i32_39 dim 1 : vector<16x128xf32>, i32 -> vector<16x128xf32>
    %101 = vector.broadcast %cst_33 : f32 to vector<16x128xf32>
    %102 = arith.select %53, %100, %101 : vector<16x128xi1>, vector<16x128xf32>
    %103 = arith.minimumf %93, %96 : vector<16x128xf32>
    %104 = arith.minimumf %99, %102 : vector<16x128xf32>
    %105 = arith.minimumf %103, %104 : vector<16x128xf32>
    %106 = arith.minimumf %71, %105 : vector<16x128xf32>
    %c1_i32_40 = arith.constant 1 : i32
    %107 = tpu.dynamic_rotate %106 by %c1_i32_40 dim 1 : vector<16x128xf32>, i32 -> vector<16x128xf32>
    %108 = vector.broadcast %cst_34 : f32 to vector<16x128xf32>
    %109 = arith.select %44, %107, %108 : vector<16x128xi1>, vector<16x128xf32>
    %c127_i32_41 = arith.constant 127 : i32
    %110 = tpu.dynamic_rotate %106 by %c127_i32_41 dim 1 : vector<16x128xf32>, i32 -> vector<16x128xf32>
    %111 = vector.broadcast %cst_34 : f32 to vector<16x128xf32>
    %112 = arith.select %53, %110, %111 : vector<16x128xi1>, vector<16x128xf32>
    %113 = arith.maximumf %109, %112 : vector<16x128xf32>
    %114 = arith.maximumf %106, %113 : vector<16x128xf32>
    %c1_i32_42 = arith.constant 1 : i32
    %115 = tpu.dynamic_rotate %114 by %c1_i32_42 dim 0 : vector<16x128xf32>, i32 -> vector<16x128xf32>
    %116 = vector.broadcast %cst_34 : f32 to vector<16x128xf32>
    %117 = arith.select %7, %115, %116 : vector<16x128xi1>, vector<16x128xf32>
    %c15_i32_43 = arith.constant 15 : i32
    %118 = tpu.dynamic_rotate %114 by %c15_i32_43 dim 0 : vector<16x128xf32>, i32 -> vector<16x128xf32>
    %119 = vector.broadcast %cst_34 : f32 to vector<16x128xf32>
    %120 = arith.select %14, %118, %119 : vector<16x128xi1>, vector<16x128xf32>
    %121 = arith.maximumf %117, %120 : vector<16x128xf32>
    %122 = arith.maximumf %114, %121 : vector<16x128xf32>
    %123 = arith.subf %71, %122 : vector<16x128xf32>
    %cst_44 = arith.constant 0.000000e+00 : f32
    %124 = vector.broadcast %cst_44 : f32 to vector<16x128xf32>
    %125 = arith.maximumf %123, %124 : vector<16x128xf32>
    %126 = arith.mulf %90, %125 : vector<16x128xf32>
    %127 = arith.subf %125, %126 : vector<16x128xf32>
    %cst_45 = arith.constant 0.000000e+00 : f32
    %128 = vector.broadcast %cst_45 : f32 to vector<16x128xf32>
    %129 = arith.maximumf %127, %128 : vector<16x128xf32>
    %130 = arith.addf %90, %129 : vector<16x128xf32>
    %c1_i32_46 = arith.constant 1 : i32
    %c1_i32_47 = arith.constant 1 : i32
    %131 = tpu.dynamic_rotate %106 by %c1_i32_47 dim 0 : vector<16x128xf32>, i32 -> vector<16x128xf32>
    %132 = vector.broadcast %cst_33 : f32 to vector<16x128xf32>
    %133 = arith.select %7, %131, %132 : vector<16x128xi1>, vector<16x128xf32>
    %c15_i32_48 = arith.constant 15 : i32
    %134 = tpu.dynamic_rotate %106 by %c15_i32_48 dim 0 : vector<16x128xf32>, i32 -> vector<16x128xf32>
    %135 = vector.broadcast %cst_33 : f32 to vector<16x128xf32>
    %136 = arith.select %14, %134, %135 : vector<16x128xi1>, vector<16x128xf32>
    %c1_i32_49 = arith.constant 1 : i32
    %137 = tpu.dynamic_rotate %106 by %c1_i32_49 dim 1 : vector<16x128xf32>, i32 -> vector<16x128xf32>
    %138 = vector.broadcast %cst_33 : f32 to vector<16x128xf32>
    %139 = arith.select %44, %137, %138 : vector<16x128xi1>, vector<16x128xf32>
    %c127_i32_50 = arith.constant 127 : i32
    %140 = tpu.dynamic_rotate %106 by %c127_i32_50 dim 1 : vector<16x128xf32>, i32 -> vector<16x128xf32>
    %141 = vector.broadcast %cst_33 : f32 to vector<16x128xf32>
    %142 = arith.select %53, %140, %141 : vector<16x128xi1>, vector<16x128xf32>
    %143 = arith.minimumf %133, %136 : vector<16x128xf32>
    %144 = arith.minimumf %139, %142 : vector<16x128xf32>
    %145 = arith.minimumf %143, %144 : vector<16x128xf32>
    %146 = arith.minimumf %106, %145 : vector<16x128xf32>
    %c1_i32_51 = arith.constant 1 : i32
    %147 = tpu.dynamic_rotate %146 by %c1_i32_51 dim 1 : vector<16x128xf32>, i32 -> vector<16x128xf32>
    %148 = vector.broadcast %cst_34 : f32 to vector<16x128xf32>
    %149 = arith.select %44, %147, %148 : vector<16x128xi1>, vector<16x128xf32>
    %c127_i32_52 = arith.constant 127 : i32
    %150 = tpu.dynamic_rotate %146 by %c127_i32_52 dim 1 : vector<16x128xf32>, i32 -> vector<16x128xf32>
    %151 = vector.broadcast %cst_34 : f32 to vector<16x128xf32>
    %152 = arith.select %53, %150, %151 : vector<16x128xi1>, vector<16x128xf32>
    %153 = arith.maximumf %149, %152 : vector<16x128xf32>
    %154 = arith.maximumf %146, %153 : vector<16x128xf32>
    %c1_i32_53 = arith.constant 1 : i32
    %155 = tpu.dynamic_rotate %154 by %c1_i32_53 dim 0 : vector<16x128xf32>, i32 -> vector<16x128xf32>
    %156 = vector.broadcast %cst_34 : f32 to vector<16x128xf32>
    %157 = arith.select %7, %155, %156 : vector<16x128xi1>, vector<16x128xf32>
    %c15_i32_54 = arith.constant 15 : i32
    %158 = tpu.dynamic_rotate %154 by %c15_i32_54 dim 0 : vector<16x128xf32>, i32 -> vector<16x128xf32>
    %159 = vector.broadcast %cst_34 : f32 to vector<16x128xf32>
    %160 = arith.select %14, %158, %159 : vector<16x128xi1>, vector<16x128xf32>
    %161 = arith.maximumf %157, %160 : vector<16x128xf32>
    %162 = arith.maximumf %154, %161 : vector<16x128xf32>
    %163 = arith.subf %106, %162 : vector<16x128xf32>
    %cst_55 = arith.constant 0.000000e+00 : f32
    %164 = vector.broadcast %cst_55 : f32 to vector<16x128xf32>
    %165 = arith.maximumf %163, %164 : vector<16x128xf32>
    %166 = arith.mulf %130, %165 : vector<16x128xf32>
    %167 = arith.subf %165, %166 : vector<16x128xf32>
    %cst_56 = arith.constant 0.000000e+00 : f32
    %168 = vector.broadcast %cst_56 : f32 to vector<16x128xf32>
    %169 = arith.maximumf %167, %168 : vector<16x128xf32>
    %170 = arith.addf %130, %169 : vector<16x128xf32>
    %c2_i32 = arith.constant 2 : i32
    %c1_i32_57 = arith.constant 1 : i32
    %171 = tpu.dynamic_rotate %146 by %c1_i32_57 dim 0 : vector<16x128xf32>, i32 -> vector<16x128xf32>
    %172 = vector.broadcast %cst_33 : f32 to vector<16x128xf32>
    %173 = arith.select %7, %171, %172 : vector<16x128xi1>, vector<16x128xf32>
    %c15_i32_58 = arith.constant 15 : i32
    %174 = tpu.dynamic_rotate %146 by %c15_i32_58 dim 0 : vector<16x128xf32>, i32 -> vector<16x128xf32>
    %175 = vector.broadcast %cst_33 : f32 to vector<16x128xf32>
    %176 = arith.select %14, %174, %175 : vector<16x128xi1>, vector<16x128xf32>
    %c1_i32_59 = arith.constant 1 : i32
    %177 = tpu.dynamic_rotate %146 by %c1_i32_59 dim 1 : vector<16x128xf32>, i32 -> vector<16x128xf32>
    %178 = vector.broadcast %cst_33 : f32 to vector<16x128xf32>
    %179 = arith.select %44, %177, %178 : vector<16x128xi1>, vector<16x128xf32>
    %c127_i32_60 = arith.constant 127 : i32
    %180 = tpu.dynamic_rotate %146 by %c127_i32_60 dim 1 : vector<16x128xf32>, i32 -> vector<16x128xf32>
    %181 = vector.broadcast %cst_33 : f32 to vector<16x128xf32>
    %182 = arith.select %53, %180, %181 : vector<16x128xi1>, vector<16x128xf32>
    %183 = arith.minimumf %173, %176 : vector<16x128xf32>
    %184 = arith.minimumf %179, %182 : vector<16x128xf32>
    %185 = arith.minimumf %183, %184 : vector<16x128xf32>
    %186 = arith.minimumf %146, %185 : vector<16x128xf32>
    %c1_i32_61 = arith.constant 1 : i32
    %187 = tpu.dynamic_rotate %186 by %c1_i32_61 dim 1 : vector<16x128xf32>, i32 -> vector<16x128xf32>
    %188 = vector.broadcast %cst_34 : f32 to vector<16x128xf32>
    %189 = arith.select %44, %187, %188 : vector<16x128xi1>, vector<16x128xf32>
    %c127_i32_62 = arith.constant 127 : i32
    %190 = tpu.dynamic_rotate %186 by %c127_i32_62 dim 1 : vector<16x128xf32>, i32 -> vector<16x128xf32>
    %191 = vector.broadcast %cst_34 : f32 to vector<16x128xf32>
    %192 = arith.select %53, %190, %191 : vector<16x128xi1>, vector<16x128xf32>
    %193 = arith.maximumf %189, %192 : vector<16x128xf32>
    %194 = arith.maximumf %186, %193 : vector<16x128xf32>
    %c1_i32_63 = arith.constant 1 : i32
    %195 = tpu.dynamic_rotate %194 by %c1_i32_63 dim 0 : vector<16x128xf32>, i32 -> vector<16x128xf32>
    %196 = vector.broadcast %cst_34 : f32 to vector<16x128xf32>
    %197 = arith.select %7, %195, %196 : vector<16x128xi1>, vector<16x128xf32>
    %c15_i32_64 = arith.constant 15 : i32
    %198 = tpu.dynamic_rotate %194 by %c15_i32_64 dim 0 : vector<16x128xf32>, i32 -> vector<16x128xf32>
    %199 = vector.broadcast %cst_34 : f32 to vector<16x128xf32>
    %200 = arith.select %14, %198, %199 : vector<16x128xi1>, vector<16x128xf32>
    %201 = arith.maximumf %197, %200 : vector<16x128xf32>
    %202 = arith.maximumf %194, %201 : vector<16x128xf32>
    %203 = arith.subf %146, %202 : vector<16x128xf32>
    %cst_65 = arith.constant 0.000000e+00 : f32
    %204 = vector.broadcast %cst_65 : f32 to vector<16x128xf32>
    %205 = arith.maximumf %203, %204 : vector<16x128xf32>
    %206 = arith.mulf %170, %205 : vector<16x128xf32>
    %207 = arith.subf %205, %206 : vector<16x128xf32>
    %cst_66 = arith.constant 0.000000e+00 : f32
    %208 = vector.broadcast %cst_66 : f32 to vector<16x128xf32>
    %209 = arith.maximumf %207, %208 : vector<16x128xf32>
    %210 = arith.addf %170, %209 : vector<16x128xf32>
    %c3_i32 = arith.constant 3 : i32
    %c1_i32_67 = arith.constant 1 : i32
    %211 = tpu.dynamic_rotate %186 by %c1_i32_67 dim 0 : vector<16x128xf32>, i32 -> vector<16x128xf32>
    %212 = vector.broadcast %cst_33 : f32 to vector<16x128xf32>
    %213 = arith.select %7, %211, %212 : vector<16x128xi1>, vector<16x128xf32>
    %c15_i32_68 = arith.constant 15 : i32
    %214 = tpu.dynamic_rotate %186 by %c15_i32_68 dim 0 : vector<16x128xf32>, i32 -> vector<16x128xf32>
    %215 = vector.broadcast %cst_33 : f32 to vector<16x128xf32>
    %216 = arith.select %14, %214, %215 : vector<16x128xi1>, vector<16x128xf32>
    %c1_i32_69 = arith.constant 1 : i32
    %217 = tpu.dynamic_rotate %186 by %c1_i32_69 dim 1 : vector<16x128xf32>, i32 -> vector<16x128xf32>
    %218 = vector.broadcast %cst_33 : f32 to vector<16x128xf32>
    %219 = arith.select %44, %217, %218 : vector<16x128xi1>, vector<16x128xf32>
    %c127_i32_70 = arith.constant 127 : i32
    %220 = tpu.dynamic_rotate %186 by %c127_i32_70 dim 1 : vector<16x128xf32>, i32 -> vector<16x128xf32>
    %221 = vector.broadcast %cst_33 : f32 to vector<16x128xf32>
    %222 = arith.select %53, %220, %221 : vector<16x128xi1>, vector<16x128xf32>
    %223 = arith.minimumf %213, %216 : vector<16x128xf32>
    %224 = arith.minimumf %219, %222 : vector<16x128xf32>
    %225 = arith.minimumf %223, %224 : vector<16x128xf32>
    %226 = arith.minimumf %186, %225 : vector<16x128xf32>
    %c1_i32_71 = arith.constant 1 : i32
    %227 = tpu.dynamic_rotate %226 by %c1_i32_71 dim 1 : vector<16x128xf32>, i32 -> vector<16x128xf32>
    %228 = vector.broadcast %cst_34 : f32 to vector<16x128xf32>
    %229 = arith.select %44, %227, %228 : vector<16x128xi1>, vector<16x128xf32>
    %c127_i32_72 = arith.constant 127 : i32
    %230 = tpu.dynamic_rotate %226 by %c127_i32_72 dim 1 : vector<16x128xf32>, i32 -> vector<16x128xf32>
    %231 = vector.broadcast %cst_34 : f32 to vector<16x128xf32>
    %232 = arith.select %53, %230, %231 : vector<16x128xi1>, vector<16x128xf32>
    %233 = arith.maximumf %229, %232 : vector<16x128xf32>
    %234 = arith.maximumf %226, %233 : vector<16x128xf32>
    %c1_i32_73 = arith.constant 1 : i32
    %235 = tpu.dynamic_rotate %234 by %c1_i32_73 dim 0 : vector<16x128xf32>, i32 -> vector<16x128xf32>
    %236 = vector.broadcast %cst_34 : f32 to vector<16x128xf32>
    %237 = arith.select %7, %235, %236 : vector<16x128xi1>, vector<16x128xf32>
    %c15_i32_74 = arith.constant 15 : i32
    %238 = tpu.dynamic_rotate %234 by %c15_i32_74 dim 0 : vector<16x128xf32>, i32 -> vector<16x128xf32>
    %239 = vector.broadcast %cst_34 : f32 to vector<16x128xf32>
    %240 = arith.select %14, %238, %239 : vector<16x128xi1>, vector<16x128xf32>
    %241 = arith.maximumf %237, %240 : vector<16x128xf32>
    %242 = arith.maximumf %234, %241 : vector<16x128xf32>
    %243 = arith.subf %186, %242 : vector<16x128xf32>
    %cst_75 = arith.constant 0.000000e+00 : f32
    %244 = vector.broadcast %cst_75 : f32 to vector<16x128xf32>
    %245 = arith.maximumf %243, %244 : vector<16x128xf32>
    %246 = arith.mulf %210, %245 : vector<16x128xf32>
    %247 = arith.subf %245, %246 : vector<16x128xf32>
    %cst_76 = arith.constant 0.000000e+00 : f32
    %248 = vector.broadcast %cst_76 : f32 to vector<16x128xf32>
    %249 = arith.maximumf %247, %248 : vector<16x128xf32>
    %250 = arith.addf %210, %249 : vector<16x128xf32>
    %c4_i32 = arith.constant 4 : i32
    %c1_i32_77 = arith.constant 1 : i32
    %251 = tpu.dynamic_rotate %226 by %c1_i32_77 dim 0 : vector<16x128xf32>, i32 -> vector<16x128xf32>
    %252 = vector.broadcast %cst_33 : f32 to vector<16x128xf32>
    %253 = arith.select %7, %251, %252 : vector<16x128xi1>, vector<16x128xf32>
    %c15_i32_78 = arith.constant 15 : i32
    %254 = tpu.dynamic_rotate %226 by %c15_i32_78 dim 0 : vector<16x128xf32>, i32 -> vector<16x128xf32>
    %255 = vector.broadcast %cst_33 : f32 to vector<16x128xf32>
    %256 = arith.select %14, %254, %255 : vector<16x128xi1>, vector<16x128xf32>
    %c1_i32_79 = arith.constant 1 : i32
    %257 = tpu.dynamic_rotate %226 by %c1_i32_79 dim 1 : vector<16x128xf32>, i32 -> vector<16x128xf32>
    %258 = vector.broadcast %cst_33 : f32 to vector<16x128xf32>
    %259 = arith.select %44, %257, %258 : vector<16x128xi1>, vector<16x128xf32>
    %c127_i32_80 = arith.constant 127 : i32
    %260 = tpu.dynamic_rotate %226 by %c127_i32_80 dim 1 : vector<16x128xf32>, i32 -> vector<16x128xf32>
    %261 = vector.broadcast %cst_33 : f32 to vector<16x128xf32>
    %262 = arith.select %53, %260, %261 : vector<16x128xi1>, vector<16x128xf32>
    %263 = arith.minimumf %253, %256 : vector<16x128xf32>
    %264 = arith.minimumf %259, %262 : vector<16x128xf32>
    %265 = arith.minimumf %263, %264 : vector<16x128xf32>
    %266 = arith.minimumf %226, %265 : vector<16x128xf32>
    %c1_i32_81 = arith.constant 1 : i32
    %267 = tpu.dynamic_rotate %266 by %c1_i32_81 dim 1 : vector<16x128xf32>, i32 -> vector<16x128xf32>
    %268 = vector.broadcast %cst_34 : f32 to vector<16x128xf32>
    %269 = arith.select %44, %267, %268 : vector<16x128xi1>, vector<16x128xf32>
    %c127_i32_82 = arith.constant 127 : i32
    %270 = tpu.dynamic_rotate %266 by %c127_i32_82 dim 1 : vector<16x128xf32>, i32 -> vector<16x128xf32>
    %271 = vector.broadcast %cst_34 : f32 to vector<16x128xf32>
    %272 = arith.select %53, %270, %271 : vector<16x128xi1>, vector<16x128xf32>
    %273 = arith.maximumf %269, %272 : vector<16x128xf32>
    %274 = arith.maximumf %266, %273 : vector<16x128xf32>
    %c1_i32_83 = arith.constant 1 : i32
    %275 = tpu.dynamic_rotate %274 by %c1_i32_83 dim 0 : vector<16x128xf32>, i32 -> vector<16x128xf32>
    %276 = vector.broadcast %cst_34 : f32 to vector<16x128xf32>
    %277 = arith.select %7, %275, %276 : vector<16x128xi1>, vector<16x128xf32>
    %c15_i32_84 = arith.constant 15 : i32
    %278 = tpu.dynamic_rotate %274 by %c15_i32_84 dim 0 : vector<16x128xf32>, i32 -> vector<16x128xf32>
    %279 = vector.broadcast %cst_34 : f32 to vector<16x128xf32>
    %280 = arith.select %14, %278, %279 : vector<16x128xi1>, vector<16x128xf32>
    %281 = arith.maximumf %277, %280 : vector<16x128xf32>
    %282 = arith.maximumf %274, %281 : vector<16x128xf32>
    %283 = arith.subf %226, %282 : vector<16x128xf32>
    %cst_85 = arith.constant 0.000000e+00 : f32
    %284 = vector.broadcast %cst_85 : f32 to vector<16x128xf32>
    %285 = arith.maximumf %283, %284 : vector<16x128xf32>
    %286 = arith.mulf %250, %285 : vector<16x128xf32>
    %287 = arith.subf %285, %286 : vector<16x128xf32>
    %cst_86 = arith.constant 0.000000e+00 : f32
    %288 = vector.broadcast %cst_86 : f32 to vector<16x128xf32>
    %289 = arith.maximumf %287, %288 : vector<16x128xf32>
    %290 = arith.addf %250, %289 : vector<16x128xf32>
    %c5_i32 = arith.constant 5 : i32
    %c1_i32_87 = arith.constant 1 : i32
    %291 = tpu.dynamic_rotate %266 by %c1_i32_87 dim 0 : vector<16x128xf32>, i32 -> vector<16x128xf32>
    %292 = vector.broadcast %cst_33 : f32 to vector<16x128xf32>
    %293 = arith.select %7, %291, %292 : vector<16x128xi1>, vector<16x128xf32>
    %c15_i32_88 = arith.constant 15 : i32
    %294 = tpu.dynamic_rotate %266 by %c15_i32_88 dim 0 : vector<16x128xf32>, i32 -> vector<16x128xf32>
    %295 = vector.broadcast %cst_33 : f32 to vector<16x128xf32>
    %296 = arith.select %14, %294, %295 : vector<16x128xi1>, vector<16x128xf32>
    %c1_i32_89 = arith.constant 1 : i32
    %297 = tpu.dynamic_rotate %266 by %c1_i32_89 dim 1 : vector<16x128xf32>, i32 -> vector<16x128xf32>
    %298 = vector.broadcast %cst_33 : f32 to vector<16x128xf32>
    %299 = arith.select %44, %297, %298 : vector<16x128xi1>, vector<16x128xf32>
    %c127_i32_90 = arith.constant 127 : i32
    %300 = tpu.dynamic_rotate %266 by %c127_i32_90 dim 1 : vector<16x128xf32>, i32 -> vector<16x128xf32>
    %301 = vector.broadcast %cst_33 : f32 to vector<16x128xf32>
    %302 = arith.select %53, %300, %301 : vector<16x128xi1>, vector<16x128xf32>
    %303 = arith.minimumf %293, %296 : vector<16x128xf32>
    %304 = arith.minimumf %299, %302 : vector<16x128xf32>
    %305 = arith.minimumf %303, %304 : vector<16x128xf32>
    %306 = arith.minimumf %266, %305 : vector<16x128xf32>
    %c1_i32_91 = arith.constant 1 : i32
    %307 = tpu.dynamic_rotate %306 by %c1_i32_91 dim 1 : vector<16x128xf32>, i32 -> vector<16x128xf32>
    %308 = vector.broadcast %cst_34 : f32 to vector<16x128xf32>
    %309 = arith.select %44, %307, %308 : vector<16x128xi1>, vector<16x128xf32>
    %c127_i32_92 = arith.constant 127 : i32
    %310 = tpu.dynamic_rotate %306 by %c127_i32_92 dim 1 : vector<16x128xf32>, i32 -> vector<16x128xf32>
    %311 = vector.broadcast %cst_34 : f32 to vector<16x128xf32>
    %312 = arith.select %53, %310, %311 : vector<16x128xi1>, vector<16x128xf32>
    %313 = arith.maximumf %309, %312 : vector<16x128xf32>
    %314 = arith.maximumf %306, %313 : vector<16x128xf32>
    %c1_i32_93 = arith.constant 1 : i32
    %315 = tpu.dynamic_rotate %314 by %c1_i32_93 dim 0 : vector<16x128xf32>, i32 -> vector<16x128xf32>
    %316 = vector.broadcast %cst_34 : f32 to vector<16x128xf32>
    %317 = arith.select %7, %315, %316 : vector<16x128xi1>, vector<16x128xf32>
    %c15_i32_94 = arith.constant 15 : i32
    %318 = tpu.dynamic_rotate %314 by %c15_i32_94 dim 0 : vector<16x128xf32>, i32 -> vector<16x128xf32>
    %319 = vector.broadcast %cst_34 : f32 to vector<16x128xf32>
    %320 = arith.select %14, %318, %319 : vector<16x128xi1>, vector<16x128xf32>
    %321 = arith.maximumf %317, %320 : vector<16x128xf32>
    %322 = arith.maximumf %314, %321 : vector<16x128xf32>
    %323 = arith.subf %266, %322 : vector<16x128xf32>
    %cst_95 = arith.constant 0.000000e+00 : f32
    %324 = vector.broadcast %cst_95 : f32 to vector<16x128xf32>
    %325 = arith.maximumf %323, %324 : vector<16x128xf32>
    %326 = arith.mulf %290, %325 : vector<16x128xf32>
    %327 = arith.subf %325, %326 : vector<16x128xf32>
    %cst_96 = arith.constant 0.000000e+00 : f32
    %328 = vector.broadcast %cst_96 : f32 to vector<16x128xf32>
    %329 = arith.maximumf %327, %328 : vector<16x128xf32>
    %330 = arith.addf %290, %329 : vector<16x128xf32>
    %c6_i32 = arith.constant 6 : i32
    %c1_i32_97 = arith.constant 1 : i32
    %331 = tpu.dynamic_rotate %306 by %c1_i32_97 dim 0 : vector<16x128xf32>, i32 -> vector<16x128xf32>
    %332 = vector.broadcast %cst_33 : f32 to vector<16x128xf32>
    %333 = arith.select %7, %331, %332 : vector<16x128xi1>, vector<16x128xf32>
    %c15_i32_98 = arith.constant 15 : i32
    %334 = tpu.dynamic_rotate %306 by %c15_i32_98 dim 0 : vector<16x128xf32>, i32 -> vector<16x128xf32>
    %335 = vector.broadcast %cst_33 : f32 to vector<16x128xf32>
    %336 = arith.select %14, %334, %335 : vector<16x128xi1>, vector<16x128xf32>
    %c1_i32_99 = arith.constant 1 : i32
    %337 = tpu.dynamic_rotate %306 by %c1_i32_99 dim 1 : vector<16x128xf32>, i32 -> vector<16x128xf32>
    %338 = vector.broadcast %cst_33 : f32 to vector<16x128xf32>
    %339 = arith.select %44, %337, %338 : vector<16x128xi1>, vector<16x128xf32>
    %c127_i32_100 = arith.constant 127 : i32
    %340 = tpu.dynamic_rotate %306 by %c127_i32_100 dim 1 : vector<16x128xf32>, i32 -> vector<16x128xf32>
    %341 = vector.broadcast %cst_33 : f32 to vector<16x128xf32>
    %342 = arith.select %53, %340, %341 : vector<16x128xi1>, vector<16x128xf32>
    %343 = arith.minimumf %333, %336 : vector<16x128xf32>
    %344 = arith.minimumf %339, %342 : vector<16x128xf32>
    %345 = arith.minimumf %343, %344 : vector<16x128xf32>
    %346 = arith.minimumf %306, %345 : vector<16x128xf32>
    %c1_i32_101 = arith.constant 1 : i32
    %347 = tpu.dynamic_rotate %346 by %c1_i32_101 dim 1 : vector<16x128xf32>, i32 -> vector<16x128xf32>
    %348 = vector.broadcast %cst_34 : f32 to vector<16x128xf32>
    %349 = arith.select %44, %347, %348 : vector<16x128xi1>, vector<16x128xf32>
    %c127_i32_102 = arith.constant 127 : i32
    %350 = tpu.dynamic_rotate %346 by %c127_i32_102 dim 1 : vector<16x128xf32>, i32 -> vector<16x128xf32>
    %351 = vector.broadcast %cst_34 : f32 to vector<16x128xf32>
    %352 = arith.select %53, %350, %351 : vector<16x128xi1>, vector<16x128xf32>
    %353 = arith.maximumf %349, %352 : vector<16x128xf32>
    %354 = arith.maximumf %346, %353 : vector<16x128xf32>
    %c1_i32_103 = arith.constant 1 : i32
    %355 = tpu.dynamic_rotate %354 by %c1_i32_103 dim 0 : vector<16x128xf32>, i32 -> vector<16x128xf32>
    %356 = vector.broadcast %cst_34 : f32 to vector<16x128xf32>
    %357 = arith.select %7, %355, %356 : vector<16x128xi1>, vector<16x128xf32>
    %c15_i32_104 = arith.constant 15 : i32
    %358 = tpu.dynamic_rotate %354 by %c15_i32_104 dim 0 : vector<16x128xf32>, i32 -> vector<16x128xf32>
    %359 = vector.broadcast %cst_34 : f32 to vector<16x128xf32>
    %360 = arith.select %14, %358, %359 : vector<16x128xi1>, vector<16x128xf32>
    %361 = arith.maximumf %357, %360 : vector<16x128xf32>
    %362 = arith.maximumf %354, %361 : vector<16x128xf32>
    %363 = arith.subf %306, %362 : vector<16x128xf32>
    %cst_105 = arith.constant 0.000000e+00 : f32
    %364 = vector.broadcast %cst_105 : f32 to vector<16x128xf32>
    %365 = arith.maximumf %363, %364 : vector<16x128xf32>
    %366 = arith.mulf %330, %365 : vector<16x128xf32>
    %367 = arith.subf %365, %366 : vector<16x128xf32>
    %cst_106 = arith.constant 0.000000e+00 : f32
    %368 = vector.broadcast %cst_106 : f32 to vector<16x128xf32>
    %369 = arith.maximumf %367, %368 : vector<16x128xf32>
    %370 = arith.addf %330, %369 : vector<16x128xf32>
    %c7_i32 = arith.constant 7 : i32
    %c1_i32_107 = arith.constant 1 : i32
    %371 = tpu.dynamic_rotate %346 by %c1_i32_107 dim 0 : vector<16x128xf32>, i32 -> vector<16x128xf32>
    %372 = vector.broadcast %cst_33 : f32 to vector<16x128xf32>
    %373 = arith.select %7, %371, %372 : vector<16x128xi1>, vector<16x128xf32>
    %c15_i32_108 = arith.constant 15 : i32
    %374 = tpu.dynamic_rotate %346 by %c15_i32_108 dim 0 : vector<16x128xf32>, i32 -> vector<16x128xf32>
    %375 = vector.broadcast %cst_33 : f32 to vector<16x128xf32>
    %376 = arith.select %14, %374, %375 : vector<16x128xi1>, vector<16x128xf32>
    %c1_i32_109 = arith.constant 1 : i32
    %377 = tpu.dynamic_rotate %346 by %c1_i32_109 dim 1 : vector<16x128xf32>, i32 -> vector<16x128xf32>
    %378 = vector.broadcast %cst_33 : f32 to vector<16x128xf32>
    %379 = arith.select %44, %377, %378 : vector<16x128xi1>, vector<16x128xf32>
    %c127_i32_110 = arith.constant 127 : i32
    %380 = tpu.dynamic_rotate %346 by %c127_i32_110 dim 1 : vector<16x128xf32>, i32 -> vector<16x128xf32>
    %381 = vector.broadcast %cst_33 : f32 to vector<16x128xf32>
    %382 = arith.select %53, %380, %381 : vector<16x128xi1>, vector<16x128xf32>
    %383 = arith.minimumf %373, %376 : vector<16x128xf32>
    %384 = arith.minimumf %379, %382 : vector<16x128xf32>
    %385 = arith.minimumf %383, %384 : vector<16x128xf32>
    %386 = arith.minimumf %346, %385 : vector<16x128xf32>
    %c1_i32_111 = arith.constant 1 : i32
    %387 = tpu.dynamic_rotate %386 by %c1_i32_111 dim 1 : vector<16x128xf32>, i32 -> vector<16x128xf32>
    %388 = vector.broadcast %cst_34 : f32 to vector<16x128xf32>
    %389 = arith.select %44, %387, %388 : vector<16x128xi1>, vector<16x128xf32>
    %c127_i32_112 = arith.constant 127 : i32
    %390 = tpu.dynamic_rotate %386 by %c127_i32_112 dim 1 : vector<16x128xf32>, i32 -> vector<16x128xf32>
    %391 = vector.broadcast %cst_34 : f32 to vector<16x128xf32>
    %392 = arith.select %53, %390, %391 : vector<16x128xi1>, vector<16x128xf32>
    %393 = arith.maximumf %389, %392 : vector<16x128xf32>
    %394 = arith.maximumf %386, %393 : vector<16x128xf32>
    %c1_i32_113 = arith.constant 1 : i32
    %395 = tpu.dynamic_rotate %394 by %c1_i32_113 dim 0 : vector<16x128xf32>, i32 -> vector<16x128xf32>
    %396 = vector.broadcast %cst_34 : f32 to vector<16x128xf32>
    %397 = arith.select %7, %395, %396 : vector<16x128xi1>, vector<16x128xf32>
    %c15_i32_114 = arith.constant 15 : i32
    %398 = tpu.dynamic_rotate %394 by %c15_i32_114 dim 0 : vector<16x128xf32>, i32 -> vector<16x128xf32>
    %399 = vector.broadcast %cst_34 : f32 to vector<16x128xf32>
    %400 = arith.select %14, %398, %399 : vector<16x128xi1>, vector<16x128xf32>
    %401 = arith.maximumf %397, %400 : vector<16x128xf32>
    %402 = arith.maximumf %394, %401 : vector<16x128xf32>
    %403 = arith.subf %346, %402 : vector<16x128xf32>
    %cst_115 = arith.constant 0.000000e+00 : f32
    %404 = vector.broadcast %cst_115 : f32 to vector<16x128xf32>
    %405 = arith.maximumf %403, %404 : vector<16x128xf32>
    %406 = arith.mulf %370, %405 : vector<16x128xf32>
    %407 = arith.subf %405, %406 : vector<16x128xf32>
    %cst_116 = arith.constant 0.000000e+00 : f32
    %408 = vector.broadcast %cst_116 : f32 to vector<16x128xf32>
    %409 = arith.maximumf %407, %408 : vector<16x128xf32>
    %410 = arith.addf %370, %409 : vector<16x128xf32>
    %c8_i32 = arith.constant 8 : i32
    %c1_i32_117 = arith.constant 1 : i32
    %411 = tpu.dynamic_rotate %386 by %c1_i32_117 dim 0 : vector<16x128xf32>, i32 -> vector<16x128xf32>
    %412 = vector.broadcast %cst_33 : f32 to vector<16x128xf32>
    %413 = arith.select %7, %411, %412 : vector<16x128xi1>, vector<16x128xf32>
    %c15_i32_118 = arith.constant 15 : i32
    %414 = tpu.dynamic_rotate %386 by %c15_i32_118 dim 0 : vector<16x128xf32>, i32 -> vector<16x128xf32>
    %415 = vector.broadcast %cst_33 : f32 to vector<16x128xf32>
    %416 = arith.select %14, %414, %415 : vector<16x128xi1>, vector<16x128xf32>
    %c1_i32_119 = arith.constant 1 : i32
    %417 = tpu.dynamic_rotate %386 by %c1_i32_119 dim 1 : vector<16x128xf32>, i32 -> vector<16x128xf32>
    %418 = vector.broadcast %cst_33 : f32 to vector<16x128xf32>
    %419 = arith.select %44, %417, %418 : vector<16x128xi1>, vector<16x128xf32>
    %c127_i32_120 = arith.constant 127 : i32
    %420 = tpu.dynamic_rotate %386 by %c127_i32_120 dim 1 : vector<16x128xf32>, i32 -> vector<16x128xf32>
    %421 = vector.broadcast %cst_33 : f32 to vector<16x128xf32>
    %422 = arith.select %53, %420, %421 : vector<16x128xi1>, vector<16x128xf32>
    %423 = arith.minimumf %413, %416 : vector<16x128xf32>
    %424 = arith.minimumf %419, %422 : vector<16x128xf32>
    %425 = arith.minimumf %423, %424 : vector<16x128xf32>
    %426 = arith.minimumf %386, %425 : vector<16x128xf32>
    %c1_i32_121 = arith.constant 1 : i32
    %427 = tpu.dynamic_rotate %426 by %c1_i32_121 dim 1 : vector<16x128xf32>, i32 -> vector<16x128xf32>
    %428 = vector.broadcast %cst_34 : f32 to vector<16x128xf32>
    %429 = arith.select %44, %427, %428 : vector<16x128xi1>, vector<16x128xf32>
    %c127_i32_122 = arith.constant 127 : i32
    %430 = tpu.dynamic_rotate %426 by %c127_i32_122 dim 1 : vector<16x128xf32>, i32 -> vector<16x128xf32>
    %431 = vector.broadcast %cst_34 : f32 to vector<16x128xf32>
    %432 = arith.select %53, %430, %431 : vector<16x128xi1>, vector<16x128xf32>
    %433 = arith.maximumf %429, %432 : vector<16x128xf32>
    %434 = arith.maximumf %426, %433 : vector<16x128xf32>
    %c1_i32_123 = arith.constant 1 : i32
    %435 = tpu.dynamic_rotate %434 by %c1_i32_123 dim 0 : vector<16x128xf32>, i32 -> vector<16x128xf32>
    %436 = vector.broadcast %cst_34 : f32 to vector<16x128xf32>
    %437 = arith.select %7, %435, %436 : vector<16x128xi1>, vector<16x128xf32>
    %c15_i32_124 = arith.constant 15 : i32
    %438 = tpu.dynamic_rotate %434 by %c15_i32_124 dim 0 : vector<16x128xf32>, i32 -> vector<16x128xf32>
    %439 = vector.broadcast %cst_34 : f32 to vector<16x128xf32>
    %440 = arith.select %14, %438, %439 : vector<16x128xi1>, vector<16x128xf32>
    %441 = arith.maximumf %437, %440 : vector<16x128xf32>
    %442 = arith.maximumf %434, %441 : vector<16x128xf32>
    %443 = arith.subf %386, %442 : vector<16x128xf32>
    %cst_125 = arith.constant 0.000000e+00 : f32
    %444 = vector.broadcast %cst_125 : f32 to vector<16x128xf32>
    %445 = arith.maximumf %443, %444 : vector<16x128xf32>
    %446 = arith.mulf %410, %445 : vector<16x128xf32>
    %447 = arith.subf %445, %446 : vector<16x128xf32>
    %cst_126 = arith.constant 0.000000e+00 : f32
    %448 = vector.broadcast %cst_126 : f32 to vector<16x128xf32>
    %449 = arith.maximumf %447, %448 : vector<16x128xf32>
    %450 = arith.addf %410, %449 : vector<16x128xf32>
    %c9_i32 = arith.constant 9 : i32
    %c1_i32_127 = arith.constant 1 : i32
    %451 = tpu.dynamic_rotate %426 by %c1_i32_127 dim 0 : vector<16x128xf32>, i32 -> vector<16x128xf32>
    %452 = vector.broadcast %cst_33 : f32 to vector<16x128xf32>
    %453 = arith.select %7, %451, %452 : vector<16x128xi1>, vector<16x128xf32>
    %c15_i32_128 = arith.constant 15 : i32
    %454 = tpu.dynamic_rotate %426 by %c15_i32_128 dim 0 : vector<16x128xf32>, i32 -> vector<16x128xf32>
    %455 = vector.broadcast %cst_33 : f32 to vector<16x128xf32>
    %456 = arith.select %14, %454, %455 : vector<16x128xi1>, vector<16x128xf32>
    %c1_i32_129 = arith.constant 1 : i32
    %457 = tpu.dynamic_rotate %426 by %c1_i32_129 dim 1 : vector<16x128xf32>, i32 -> vector<16x128xf32>
    %458 = vector.broadcast %cst_33 : f32 to vector<16x128xf32>
    %459 = arith.select %44, %457, %458 : vector<16x128xi1>, vector<16x128xf32>
    %c127_i32_130 = arith.constant 127 : i32
    %460 = tpu.dynamic_rotate %426 by %c127_i32_130 dim 1 : vector<16x128xf32>, i32 -> vector<16x128xf32>
    %461 = vector.broadcast %cst_33 : f32 to vector<16x128xf32>
    %462 = arith.select %53, %460, %461 : vector<16x128xi1>, vector<16x128xf32>
    %463 = arith.minimumf %453, %456 : vector<16x128xf32>
    %464 = arith.minimumf %459, %462 : vector<16x128xf32>
    %465 = arith.minimumf %463, %464 : vector<16x128xf32>
    %466 = arith.minimumf %426, %465 : vector<16x128xf32>
    %c1_i32_131 = arith.constant 1 : i32
    %467 = tpu.dynamic_rotate %466 by %c1_i32_131 dim 1 : vector<16x128xf32>, i32 -> vector<16x128xf32>
    %468 = vector.broadcast %cst_34 : f32 to vector<16x128xf32>
    %469 = arith.select %44, %467, %468 : vector<16x128xi1>, vector<16x128xf32>
    %c127_i32_132 = arith.constant 127 : i32
    %470 = tpu.dynamic_rotate %466 by %c127_i32_132 dim 1 : vector<16x128xf32>, i32 -> vector<16x128xf32>
    %471 = vector.broadcast %cst_34 : f32 to vector<16x128xf32>
    %472 = arith.select %53, %470, %471 : vector<16x128xi1>, vector<16x128xf32>
    %473 = arith.maximumf %469, %472 : vector<16x128xf32>
    %474 = arith.maximumf %466, %473 : vector<16x128xf32>
    %c1_i32_133 = arith.constant 1 : i32
    %475 = tpu.dynamic_rotate %474 by %c1_i32_133 dim 0 : vector<16x128xf32>, i32 -> vector<16x128xf32>
    %476 = vector.broadcast %cst_34 : f32 to vector<16x128xf32>
    %477 = arith.select %7, %475, %476 : vector<16x128xi1>, vector<16x128xf32>
    %c15_i32_134 = arith.constant 15 : i32
    %478 = tpu.dynamic_rotate %474 by %c15_i32_134 dim 0 : vector<16x128xf32>, i32 -> vector<16x128xf32>
    %479 = vector.broadcast %cst_34 : f32 to vector<16x128xf32>
    %480 = arith.select %14, %478, %479 : vector<16x128xi1>, vector<16x128xf32>
    %481 = arith.maximumf %477, %480 : vector<16x128xf32>
    %482 = arith.maximumf %474, %481 : vector<16x128xf32>
    %483 = arith.subf %426, %482 : vector<16x128xf32>
    %cst_135 = arith.constant 0.000000e+00 : f32
    %484 = vector.broadcast %cst_135 : f32 to vector<16x128xf32>
    %485 = arith.maximumf %483, %484 : vector<16x128xf32>
    %486 = arith.mulf %450, %485 : vector<16x128xf32>
    %487 = arith.subf %485, %486 : vector<16x128xf32>
    %cst_136 = arith.constant 0.000000e+00 : f32
    %488 = vector.broadcast %cst_136 : f32 to vector<16x128xf32>
    %489 = arith.maximumf %487, %488 : vector<16x128xf32>
    %490 = arith.addf %450, %489 : vector<16x128xf32>
    %c0_137 = arith.constant 0 : index
    %c0_138 = arith.constant 0 : index
    %c0_139 = arith.constant 0 : index
    %c0_140 = arith.constant 0 : index
    %491 = vector.load %arg3[%c0_137, %c0_138, %c0_139, %c0_140] : memref<1x1x16x128xf32, #tpu.memory_space<vmem>>, vector<1x1x16x128xf32>
    %492 = vector.shape_cast %491 : vector<1x1x16x128xf32> to vector<16x128xf32>
    %493 = arith.mulf %490, %492 : vector<16x128xf32>
    %494 = vector.shape_cast %493 : vector<16x128xf32> to vector<1x16x128xf32>
    %cst_141 = arith.constant dense<0.000000e+00> : vector<1xf32>
    %495 = vector.multi_reduction <add>, %494, %cst_141 [1, 2] : vector<1x16x128xf32> to vector<1xf32>
    %496 = vector.shape_cast %495 : vector<1xf32> to vector<1x1x1xf32>
    %497 = vector.extract %496[0, 0, 0] : f32 from vector<1x1x1xf32>
    %498 = vector.broadcast %497 : f32 to vector<1x1xf32>
    %499 = vector.shape_cast %490 : vector<16x128xf32> to vector<1x16x128xf32>
    %cst_142 = arith.constant dense<0.000000e+00> : vector<1xf32>
    %500 = vector.multi_reduction <add>, %499, %cst_142 [1, 2] : vector<1x16x128xf32> to vector<1xf32>
    %501 = vector.shape_cast %500 : vector<1xf32> to vector<1x1x1xf32>
    %502 = vector.extract %501[0, 0, 0] : f32 from vector<1x1x1xf32>
    %503 = vector.broadcast %502 : f32 to vector<1x1xf32>
    %504 = tpu.iota {dimensions = array<i32: 2>} : vector<1x1x8x128xi32>
    %505 = tpu.iota {dimensions = array<i32: 3>} : vector<1x1x8x128xi32>
    %c0_i32_143 = arith.constant 0 : i32
    %506 = vector.broadcast %c0_i32_143 : i32 to vector<1x1x8x128xi32>
    %507 = arith.cmpi eq, %504, %506 : vector<1x1x8x128xi32>
    %c0_i32_144 = arith.constant 0 : i32
    %508 = vector.broadcast %c0_i32_144 : i32 to vector<1x1x8x128xi32>
    %509 = arith.cmpi eq, %505, %508 : vector<1x1x8x128xi32>
    %510 = arith.andi %507, %509 : vector<1x1x8x128xi1>
    %c1_i32_145 = arith.constant 1 : i32
    %511 = vector.broadcast %c1_i32_145 : i32 to vector<1x1x8x128xi32>
    %512 = arith.cmpi eq, %505, %511 : vector<1x1x8x128xi32>
    %513 = arith.andi %507, %512 : vector<1x1x8x128xi1>
    %cst_146 = arith.constant 0.000000e+00 : f32
    %514 = vector.shape_cast %503 : vector<1x1xf32> to vector<1x1x1x1xf32>
    %515 = vector.broadcast %514 : vector<1x1x1x1xf32> to vector<1x1x8x128xf32>
    %516 = vector.broadcast %cst_146 : f32 to vector<1x1x8x128xf32>
    %517 = arith.select %513, %515, %516 : vector<1x1x8x128xi1>, vector<1x1x8x128xf32>
    %518 = vector.shape_cast %498 : vector<1x1xf32> to vector<1x1x1x1xf32>
    %519 = vector.broadcast %518 : vector<1x1x1x1xf32> to vector<1x1x8x128xf32>
    %520 = arith.select %510, %519, %517 : vector<1x1x8x128xi1>, vector<1x1x8x128xf32>
    %c0_147 = arith.constant 0 : index
    %c0_148 = arith.constant 0 : index
    %c0_149 = arith.constant 0 : index
    %c0_150 = arith.constant 0 : index
    %521 = vector.load %arg4[%c0_147, %c0_148, %c0_149, %c0_150] : memref<1x1x8x128xf32, #tpu.memory_space<vmem>>, vector<1x1x8x128xf32>
    tpu.vector_store %arg4[%c0_147, %c0_148, %c0_149, %c0_150], %520 {strides = array<i32>} : memref<1x1x8x128xf32, #tpu.memory_space<vmem>>, vector<1x1x8x128xf32>,
    return
  }
  func.func @transform_0(%arg0: i32, %arg1: i32) -> (i32, i32, i32, i32) {
    %c0_i32 = arith.constant 0 : i32
    %c0_i32_0 = arith.constant 0 : i32
    %c0_i32_1 = arith.constant 0 : i32
    return %arg0, %arg1, %c0_i32, %c0_i32_0 : i32, i32, i32, i32
  }
  func.func @transform_1(%arg0: i32, %arg1: i32) -> (i32, i32, i32, i32) {
    %c1_i32 = arith.constant 1 : i32
    %0 = arith.subi %c1_i32, %arg0 : i32
    %c0_i32 = arith.constant 0 : i32
    %c0_i32_0 = arith.constant 0 : i32
    %c0_i32_1 = arith.constant 0 : i32
    return %0, %arg1, %c0_i32, %c0_i32_0 : i32, i32, i32, i32
  }
  func.func @transform_2(%arg0: i32, %arg1: i32) -> (i32, i32, i32, i32) {
    %c0_i32 = arith.constant 0 : i32
    %c0_i32_0 = arith.constant 0 : i32
    %c0_i32_1 = arith.constant 0 : i32
    return %arg0, %arg1, %c0_i32, %c0_i32_0 : i32, i32, i32, i32
  }
}

</mosaic_0001>

<bundles_post_ra>
// kernel: tpu_custom_call.1
= control target key start
LH: loop header
LB: loop body
LE: loop exit
PB: predicated region body
PF: predicated region fallthrough
CT: control target
= control target key end

     0   :  { %s2724_s0 = inlined_call_operand.hbm [shape: f32[2,1,16,128], index: 0, kind: input, shape index: {}]   ;;  %s2725_s1 = inlined_call_operand.hbm [shape: f32[2,1,16,128], index: 1, kind: input, shape index: {}]   ;;  %s2726_s2 = inlined_call_operand.hbm [shape: f32[2,1,8,128], index: 2, kind: output, shape index: {}]  }
   0x1   :  { %2734 = sst [smem:[#allocation11_spill]] %s2724_s0 }
   0x2   :  { %7 = vsyncpa [#allocation3], 0 }
   0x3   :  { %9 = vsyncpa [#allocation3 + $0x1], 0 }
   0x4   :  { %10 = vsyncpa [#allocation6], 0 }
   0x5   :  { %12 = vsyncpa [#allocation6 + $0x1], 0 }
   0x6   :  { %13 = vsyncpa [#allocation4], 0 }
   0x7   :  { %15 = vsyncpa [#allocation4 + $0x1], 0  ;;  %s1509_s9 = smov 0   ;;  %s1511_s10 = smov 0  }
   0x8   :  { %s1513_s11 = smov 0   ;;  %s1515_s12 = smov 0  }
   0x9   :  { %s1517_s13 = smov 0   ;;  %s1519_s14 = smov 0  }
   0xa   :  { %s1521_s15 = smov 0   ;;  %s1523_s16 = smov 0  }
   0xb   :  { %s1525_s17 = smov 0  }
   0xc LB: > { %s1196_s18 = sadd.s32 4294967295, %s1485_s17   ;;  %s1197_s19 = sadd.s32 4294967294, %s1485_s17   ;;  %s1485_s17 = sphi %s1525_s17, %s21_s17   ;;  %s1481_s16 = sphi %s1523_s16, %s2779_s16   ;;  %s1477_s15 = sphi %s1521_s15, %s2778_s15   ;;  %s1473_s14 = sphi %s1519_s14, %s2777_s14   ;;  %s1469_s13 = sphi %s1517_s13, %s2776_s13   ;;  %s1465_s12 = sphi %s1515_s12, %s2775_s12   ;;  %s1461_s11 = sphi %s1513_s11, %s2774_s11   ;;  %s1457_s10 = sphi %s1511_s10, %s2773_s10   ;;  %s1453_s9 = sphi %s1509_s9, %s2772_s9  }
   0xd   : > { %s42_s20 = sadd.s32 1, %s1473_s14  ;;  %p49_p0 = scmp.ne.s32.totalorder %s1473_s14, %s1469_s13 }
   0xe   : > { %p2728_p1 = scmp.eq.s32.totalorder %s1485_s17, 0  ;;  %p55_p2 = scmp.ne.s32.totalorder %s1469_s13, %s1465_s12 }
   0xf   : > { %p1562_p3 = scmp.eq.s32.totalorder %s1196_s18, 0  ;;  %p111_p4 = scmp.eq.s32.totalorder %s1196_s18, 1 }
  0x10   : > { %p1568_p5 = por %p2728_p1, %p49_p0  ;;  %p117_p6 = scmp.eq.s32.totalorder %s1197_s19, 1 }
  0x11   : > { %p1574_p7 = por %p1562_p3, %p55_p2  ;;  %p1578_p8 = por %p111_p4, %p49_p0 }
  0x12   : > { %p1582_p9 = por %p117_p6, %p55_p2  ;;  %p2727_p11 = scmp.lt.s32.totalorder %s1485_s17, 2 }
  0x13   : > { %s2737_s23 = scalar_select %p1574_p7, 1, 0 }
  0x14   : > { %s2738_s24 = scalar_select %p1578_p8, 1, 0 }
  0x15   : > { %s2739_s25 = scalar_select %p1582_p9, 1, 0 }
  0x16   : > { %s137_s26 = sand.u32 1, %s1473_s14   ;;  %s1214_s28 = sshll.u32 %s1481_s16, 8 }
  0x17   : > { %s1200_s27 = sshll.u32 %s137_s26, 4  ;;  %s2740_s0 = sld [smem:[#allocation11_spill]] }
  0x18   : > { %s141_s4 = scalar_lea.vmem [#allocation2], %s1200_s27  ;;  %p1601_p12 = pnand %p2727_p11, %p1568_p5 }
  0x19   : > { %s150_s5 = sshll.u32 %s141_s4, 4  ;;  %s1606_s7 = scalar_lea.sflag [#allocation3], %s137_s26  ;;  %s1595_s5 = int_to_ptr.vmem [resolvable:$true] %s150_s5 }
  0x1a   : > { %p1317_p2 = pneg %p1601_p12 }
  0x1d   : > { %s1593_s3 = scalar_lea.hbm %s2740_s0, %s1214_s28  ;;  %s1320_s22 = scalar_lea.hbm %s2740_s0, 512 }
  0x1e   : > { %s1315_s8 = scalar_lea.hbm %s1593_s3, 256  ;;  %p1321_p5 = scmp.lt.u32.totalorder %s1593_s3, %s2740_s0 }
  0x1f   : > { %p1316_p0 = scmp.ne.s32.totalorder %s1593_s3, %s1315_s8  ;;  %p1322_p10 = scmp.lt.u32.totalorder %s1320_s22, %s1315_s8 }
  0x20   : > { %p1324_p1 = scmp.lt.u32.totalorder %s1315_s8, %s1593_s3 }
  0x21   : > { %p1318_p4 = pnand %p1317_p2, %p1316_p0  ;;  %p1323_p11 = por %p1322_p10, %p1321_p5 }
  0x23   : > { %p1319_p6 = pneg %p1318_p4  ;;  %p1325_p13 = por %p1324_p1, %p1323_p11 }
  0x25   : > { %p1326_p9 = pnand %p1325_p13, %p1319_p6 }
  0x27   : > { %1329 = shalt.err (!%p1326_p9)
}
  0x28   : > { %s1330_s26 = scalar_lea.vmem %s1595_s5, 256  ;;  %s1487_s29 = smov [#allocation2]  }
  0x29   : > { %p1331_p0 = scmp.ne.s32.totalorder %s1595_s5, %s1330_s26  ;;  %s1335_s30 = sshll.u32 %s1487_s29, 4  ;;  %s1336_s30 = int_to_ptr.vmem [resolvable:$false] %s1335_s30 }
  0x2a   : > { %s1337_s4 = scalar_lea.vmem %s1336_s30, 512  ;;  %p1338_p7 = scmp.lt.s32.totalorder %s1595_s5, %s1336_s30 }
  0x2b   : > { %p1333_p4 = pnand %p1331_p0, %p1317_p2  ;;  %p1339_p10 = scmp.lt.s32.totalorder %s1337_s4, %s1330_s26 }
  0x2d   : > { %p1334_p8 = pneg %p1333_p4  ;;  %p1340_p5 = por %p1339_p10, %p1338_p7 }
  0x2f   : > { %p1341_p1 = pnand %p1340_p5, %p1334_p8 }
  0x31   : > { %1344 = shalt.err (!%p1341_p1)
}
  0x32   : > { %s2731_s8 = smov 128   ;;  %s2732_s18 = smov 8  }
  0x33   : > { %1229 = dma.hbm_to_vmem [thread:$0]  (!%p1601_p12), %s1593_s3, 256, %s1595_s5, %s1606_s7, %s2731_s8, %s2731_s8, %s2732_s18  }
  0x34   : > { %p182_p7 = scmp.lt.s32.totalorder %s1485_s17, 3  ;;  %p2742_p8 = scmp.ge.s32.totalorder %s1485_s17, 1 }
  0x35   : > { %s33_s22 = sadd.s32 1, %s1481_s16  ;;  %s65_s27 = ssub.s32 1, %s1481_s16 }
  0x36   : > { %p1640_p9 = pnand %p2742_p8, %p182_p7  ;;  %p35_p11 = scmp.ge.s32.totalorder %s33_s22, 2 }
  0x37   : > { %s72_s28 = sadd.s32 1, %s1461_s11  ;;  %p79_p13 = scmp.ne.s32.totalorder %s1461_s11, %s1457_s10 }
  0x38   : > { %p85_p2 = scmp.ne.s32.totalorder %s1457_s10, %s1453_s9  ;;  %s2781_s22 = smov (%p35_p11, %s33_s22), 0 }
  0x39   : > { %p2744_p6 = scmp.eq.s32.totalorder %s1485_s17, 0  ;;  %s37_s6 = ssub.s32 %s1481_s16, %s2781_s22 }
  0x3a   : > { %p1661_p0 = por %p85_p2, %p1562_p3  ;;  %s66_s7 = ssub.s32 1, %s2781_s22 }
  0x3b   : > { %p1655_p12 = por %p79_p13, %p2744_p6  ;;  %p40_p4 = scmp.eq.s32.totalorder %s37_s6, 0 }
  0x3c   : > { %s2746_s5 = scalar_select %p1661_p0, 1, 0 }
  0x3d   : > { %s67_s9 = ssub.s32 %s65_s27, %s66_s7  ;;  %s160_s26 = sand.u32 1, %s1461_s11  }
  0x3e   : > { %p70_p10 = scmp.eq.s32.totalorder %s67_s9, 0  ;;  %s1203_s4 = sshll.u32 %s160_s26, 4 }
  0x3f   : > { %s1672_s29 = scalar_select %p40_p4, %s1473_s14, %s42_s20  }
  0x40   : > { %s1675_s30 = scalar_select %p70_p10, %s1461_s11, %s72_s28  }
  0x41   : > { %s1215_s8 = sshll.u32 %s65_s27, 8  ;;  %s164_s6 = scalar_lea.vmem [#allocation5], %s1203_s4 }
  0x42   : > { %s1680_s0 = scalar_lea.hbm %s2725_s1, %s1215_s8  ;;  %s174_s7 = sshll.u32 %s164_s6, 4  ;;  %s1682_s7 = int_to_ptr.vmem [resolvable:$true] %s174_s7 }
  0x43   : > { %p2747_p3 = scmp.lt.s32.totalorder %s1485_s17, 2  ;;  %s1692_s27 = scalar_lea.sflag [#allocation6], %s160_s26 }
  0x44   : > { %s1345_s8 = scalar_lea.hbm %s1680_s0, 256  ;;  %s1350_s3 = scalar_lea.hbm %s2725_s1, 512 }
  0x45   : > { %p1688_p5 = pnand %p2747_p3, %p1655_p12  ;;  %p1346_p1 = scmp.ne.s32.totalorder %s1680_s0, %s1345_s8 }
  0x46   : > { %p1351_p13 = scmp.lt.u32.totalorder %s1680_s0, %s2725_s1  ;;  %p1352_p2 = scmp.lt.u32.totalorder %s1350_s3, %s1345_s8 }
  0x47   : > { %p1347_p7 = pneg %p1688_p5  ;;  %p1354_p12 = scmp.lt.u32.totalorder %s1345_s8, %s1680_s0 }
  0x48   : > { %p1353_p6 = por %p1352_p2, %p1351_p13 }
  0x49   : > { %p1348_p8 = pnand %p1347_p7, %p1346_p1 }
  0x4a   : > { %p1355_p4 = por %p1354_p12, %p1353_p6 }
  0x4b   : > { %p1349_p11 = pneg %p1348_p8 }
  0x4d   : > { %p1356_p10 = pnand %p1355_p4, %p1349_p11 }
  0x4f   : > { %1359 = shalt.err (!%p1356_p10)
}
  0x50   : > { %s1360_s26 = scalar_lea.vmem %s1682_s7, 256  ;;  %s1490_s21 = smov [#allocation5]  }
  0x51   : > { %p1361_p3 = scmp.ne.s32.totalorder %s1682_s7, %s1360_s26  ;;  %s1365_s6 = sshll.u32 %s1490_s21, 4  ;;  %s1366_s6 = int_to_ptr.vmem [resolvable:$false] %s1365_s6 }
  0x52   : > { %s1367_s18 = scalar_lea.vmem %s1366_s6, 512  ;;  %p1368_p0 = scmp.lt.s32.totalorder %s1682_s7, %s1366_s6 }
  0x53   : > { %p1363_p1 = pnand %p1361_p3, %p1347_p7  ;;  %p1369_p13 = scmp.lt.s32.totalorder %s1367_s18, %s1360_s26 }
  0x55   : > { %p1364_p8 = pneg %p1363_p1  ;;  %p1370_p2 = por %p1369_p13, %p1368_p0 }
  0x57   : > { %p1371_p6 = pnand %p1370_p2, %p1364_p8 }
  0x59   : > { %1374 = shalt.err (!%p1371_p6)
}
  0x5a   : > { %s2749_s8 = smov 8   ;;  %s2750_s28 = smov 128  }
  0x5b   : > { %1232 = dma.hbm_to_vmem [thread:$0]  (!%p1688_p5), %s1680_s0, 256, %s1682_s7, %s1692_s27, %s2750_s28, %s2750_s28, %s2749_s8  }
  0x5c   : > { %186 = sbr.rel (%p1640_p9) target bundleno = 1871 (0x74f), region = 28  ;;  %s1726_s3 = sand.u32 (!%p1640_p9), 1, %s1469_s13  }
  0x5d   : > { %s1207_s9 = sshll.u32 (!%p1640_p9), %s1726_s3, 4  ;;  %s189_s4 = scalar_lea.sflag (!%p1640_p9), [#allocation3], %s1726_s3 }
  0x5e   : > { %s192_s26 = scalar_lea.vmem (!%p1640_p9), [#allocation2], %s1207_s9  ;;  %p2751_p0 = scmp.ne.s32.totalorder (!%p1640_p9), %s2737_s23, 0 }
  0x63   : > { %1440 = dma.done.wait (%p2751_p0), %s189_s4, 256  }
  0x64   : > { %1442 = vsyncadd (%p2751_p0), %s189_s4, 4294967040  ;;  %s197_s0 = sand.u32 1, %s1457_s10   ;;  %p2752_p9 = scmp.ne.s32.totalorder %s2746_s5, 0 }
  0x65   : > { %s1735_s7 = sshll.u32 %s197_s0, 4  ;;  %s198_s19 = scalar_lea.sflag [#allocation6], %s197_s0 }
  0x66   : > { %s201_s20 = scalar_lea.vmem [#allocation5], %s1735_s7 }
  0x67   : > { %1444 = dma.done.wait (%p2752_p9), %s198_s19, 256  }
  0x68   : > { %1446 = vsyncadd (%p2752_p9), %s198_s19, 4294967040  ;;  %v228_v0 = vlaneseq  ;;  %s1491_s27 = smov 1   ;;  %v1746_v2 = vld [vmem:[%s192_s26] sm:$0xff]  ;;  %s1492_s23 = smov 127   ;;  %v1752_v3 = vld [vmem:[%s192_s26 + $0x8] sm:$0xff] }
  0x69   : > { %303 = vrot.lane.b32.xlu1 %v1746_v2, %s1491_s27  ;;  %v292_v19 = vrot.slane %v1752_v3, 7  ;;  %v298_v20 = vrot.slane %v1752_v3, 1  ;;  %v291_v22 = vrot.slane %v1746_v2, 7  ;;  %v297_v23 = vrot.slane %v1746_v2, 1  ;;  %v1039_v29 = vld [vmem:[%s201_s20] sm:$0xff]  ;;  %s1209_s5 = sshll.u32 %s1726_s3, 3 }
  0x6a   : > { %v1742_v1 = vand.u32 127, %v228_v0  ;;  %v1760_v4 = vshrl.u32 %v228_v0, 7  ;;  %s1211_s21 = sshll.u32 %s1477_s15, 7  ;;  %s226_s18 = scalar_lea.vmem [#allocation7], %s1209_s5 }
  0x6b   : > { %s1088_s8 = sshll.u32 %s226_s18, 4  ;;  %s2666_s26 = scalar_lea.hbm %s2726_s2, %s1211_s21  ;;  %s2668_s8 = int_to_ptr.vmem [resolvable:$true] %s1088_s8 }
  0x6c   : > { %273 = vrot.lane.b32.xlu0 %v1742_v1, %s1491_s27  ;;  %v230_v5 = vadd.s32 8, %v1760_v4  ;;  %v231_v6 = vrot.slane %v1760_v4, 7  ;;  %vm233_vm0 = vcmp.lt.s32.totalorder %v1760_v4, 1  ;;  %v244_v8 = vrot.slane %v1760_v4, 1  ;;  %s1074_s15 = scalar_lea.sflag [#allocation4], %s1726_s3  ;;  %s1375_s0 = scalar_lea.vmem %s2668_s8, 128 }
  0x6d   : > { %305 = vrot.lane.b32.xlu1 %v1752_v3, %s1491_s27  ;;  %vm246_vm1 = vcmp.lt.s32.totalorder %v1760_v4, 7  ;;  %v263_v17 = vand.u32 15, %v1742_v1  ;;  %v294_v31 = vsel %vm233_vm0, %v292_v19, %v291_v22  ;;  %v293_v36 = vsel %vm233_vm0, %v291_v22, %v292_v19  ;;  %p1376_p5 = scmp.ne.s32.totalorder %s2668_s8, %s1375_s0  ;;  %p2769_p7 = scmp.ne.s32.totalorder %s2738_s24, 0 }
  0x6e   : > { %v232_v7 = vrot.slane %v230_v5, 7  ;;  %v245_v9 = vrot.slane %v230_v5, 1  ;;  %v299_v32 = vsel %vm246_vm1, %v297_v23, %v298_v20  ;;  %v300_v37 = vsel %vm246_vm1, %v298_v20, %v297_v23  ;;  %s1493_s7 = smov [#allocation7]  }
  0x6f   : > { %vm1786_vm9 = vcmp.ne.s32.totalorder %v263_v17, 15  ;;  %vm1795_vm11 = vcmp.ne.s32.totalorder %v263_v17, 0  ;;  %p1377_p11 = pnand %p1376_p5, %p2769_p7  ;;  %s1379_s19 = sshll.u32 %s1493_s7, 4  ;;  %s1380_s19 = int_to_ptr.vmem [resolvable:$false] %s1379_s19 }
  0x70   : > { %281 = vrot.lane.b32.xlu0 %v1742_v1, %s1492_s23  ;;  %v235_v10 = vsel %vm233_vm0, %v232_v7, %v231_v6  ;;  %v234_v11 = vsel %vm233_vm0, %v231_v6, %v232_v7  ;;  %v247_v12 = vsel %vm246_vm1, %v244_v8, %v245_v9  ;;  %v248_v15 = vsel %vm246_vm1, %v245_v9, %v244_v8  ;;  %p1382_p4 = scmp.lt.s32.totalorder %s2668_s8, %s1380_s19 }
  0x71   : > { %311 = vrot.lane.b32.xlu1 %v1752_v3, %s1492_s23  ;;  %v236_v13 = vsub.s32 %v235_v10, %v1760_v4  ;;  %v237_v14 = vsub.s32 %v234_v11, %v230_v5  ;;  %v249_v16 = vsub.s32 %v247_v12, %v1760_v4  ;;  %v250_v18 = vsub.s32 %v248_v15, %v230_v5  ;;  %p1378_p12 = pneg %p1377_p11 }
  0x73   : > { %vm238_vm2 = vcmp.eq.s32.totalorder %v236_v13, 1  ;;  %vm240_vm3 = vcmp.eq.s32.totalorder %v236_v13, 4294967295  ;;  %vm239_vm4 = vcmp.eq.s32.totalorder %v237_v14, 1  ;;  %vm241_vm5 = vcmp.eq.s32.totalorder %v237_v14, 4294967295 }
  0x74   : > { %309 = vrot.lane.b32.xlu0 %v1746_v2, %s1492_s23  ;;  %vm251_vm6 = vcmp.eq.s32.totalorder %v249_v16, 1  ;;  %vm253_vm7 = vcmp.eq.s32.totalorder %v249_v16, 4294967295  ;;  %vm1782_vm8 = vmor %vm238_vm2, %vm240_vm3  ;;  %vm252_vm12 = vcmp.eq.s32.totalorder %v250_v18, 1  ;;  %vm254_vm13 = vcmp.eq.s32.totalorder %v250_v18, 4294967295 }
  0x75   : > { %vm1791_vm10 = vmor %vm239_vm4, %vm241_vm5  ;;  %v295_v39 = vsel %vm1782_vm8, %v294_v31, inf }
  0x76   : > { %vm1799_vm14 = vmor %vm251_vm6, %vm253_vm7  ;;  %v296_v45 = vsel %vm1791_vm10, %v293_v36, inf }
  0x77   : > { %vm1812_vm5 = vmor %vm252_vm12, %vm254_vm13  ;;  %v301_v40 = vsel %vm1799_vm14, %v299_v32, inf }
  0x78   : > { %v315_v44 = vmin.f32 %v295_v39, %v301_v40  ;;  %v302_v46 = vsel %vm1812_vm5, %v300_v37, inf }
  0x79   : > { %v316_v51 = vmin.f32 %v296_v45, %v302_v46 }
  0xdb   : > { %v304_v34 = vpop.permute.xlu1 %303 }
  0xde   : > { %v274_v21 = vpop.permute.xlu0 %273 }
  0xdf   : > { %v275_v26 = vsub.s32 %v274_v21, %v1742_v1  ;;  %v306_v42 = vpop.permute.xlu1 %305 }
  0xe1   : > { %vm276_vm15 = vcmp.eq.s32.totalorder %v275_v26, 1  ;;  %vm278_vm2 = vcmp.eq.s32.totalorder %v275_v26, 4294967295 }
  0xe2   : > { %vm277_vm3 = vmand %vm276_vm15, %vm1786_vm9  ;;  %v282_v30 = vpop.permute.xlu0 %281 }
  0xe3   : > { %vm279_vm4 = vmand %vm278_vm2, %vm1795_vm11  ;;  %v283_v33 = vsub.s32 %v282_v30, %v1742_v1  ;;  %v312_v50 = vpop.permute.xlu1 %311 }
  0xe4   : > { %vm1820_vm6 = vmor %vm277_vm3, %vm279_vm4 }
  0xe5   : > { %vm284_vm7 = vcmp.eq.s32.totalorder %v283_v33, 1  ;;  %vm286_vm15 = vcmp.eq.s32.totalorder %v283_v33, 4294967295  ;;  %v307_v47 = vsel %vm1820_vm6, %v304_v34, inf  ;;  %v308_v52 = vsel %vm1820_vm6, %v306_v42, inf }
  0xe6   : > { %vm285_vm12 = vmand %vm284_vm7, %vm1786_vm9  ;;  %v310_v41 = vpop.permute.xlu0 %309 }
  0xe7   : > { %vm287_vm13 = vmand %vm286_vm15, %vm1795_vm11 }
  0xe8   : > { %vm1832_vm2 = vmor %vm285_vm12, %vm287_vm13 }
  0xe9   : > { %v313_v48 = vsel %vm1832_vm2, %v310_v41, inf  ;;  %v314_v54 = vsel %vm1832_vm2, %v312_v50, inf }
  0xea   : > { %v317_v49 = vmin.f32 %v307_v47, %v313_v48  ;;  %v318_v55 = vmin.f32 %v308_v52, %v314_v54 }
  0xec   : > { %v319_v53 = vmin.f32 %v315_v44, %v317_v49  ;;  %v320_v57 = vmin.f32 %v316_v51, %v318_v55 }
  0xee   : > { %v1849_v56 = vmin.f32 %v1746_v2, %v319_v53  ;;  %v1854_v58 = vmin.f32 %v1752_v3, %v320_v57 }
  0xf0   : > { %323 = vrot.lane.b32.xlu0 %v1849_v56, %s1491_s27  ;;  %325 = vrot.lane.b32.xlu1 %v1854_v58, %s1491_s27  ;;  %v360_v59 = vrot.slane %v1854_v58, 7  ;;  %v366_v60 = vrot.slane %v1854_v58, 1  ;;  %v359_v61 = vrot.slane %v1849_v56, 7  ;;  %v365_v62 = vrot.slane %v1849_v56, 1 }
  0xf2   : > { %v362_v0 = vsel %vm233_vm0, %v360_v59, %v359_v61  ;;  %v367_v5 = vsel %vm246_vm1, %v365_v62, %v366_v60  ;;  %v361_v6 = vsel %vm233_vm0, %v359_v61, %v360_v59  ;;  %v368_v10 = vsel %vm246_vm1, %v366_v60, %v365_v62 }
  0xf3   : > { %v363_v8 = vsel %vm1782_vm8, %v362_v0, inf  ;;  %v369_v9 = vsel %vm1799_vm14, %v367_v5, inf  ;;  %v364_v12 = vsel %vm1791_vm10, %v361_v6, inf  ;;  %v370_v20 = vsel %vm1812_vm5, %v368_v10, inf }
  0xf4   : > { %329 = vrot.lane.b32.xlu0 %v1849_v56, %s1492_s23  ;;  %331 = vrot.lane.b32.xlu1 %v1854_v58, %s1492_s23  ;;  %v375_v18 = vmin.f32 %v363_v8, %v369_v9  ;;  %v376_v32 = vmin.f32 %v364_v12, %v370_v20 }
 0x162   : > { %v324_v63 = vpop.permute.xlu0 %323  ;;  %v326_v7 = vpop.permute.xlu1 %325 }
 0x163   : > { %v327_v13 = vsel %vm1820_vm6, %v324_v63, -inf  ;;  %v371_v14 = vsel %vm1820_vm6, %v324_v63, inf  ;;  %v328_v21 = vsel %vm1820_vm6, %v326_v7, -inf  ;;  %v372_v22 = vsel %vm1820_vm6, %v326_v7, inf }
 0x166   : > { %v330_v11 = vpop.permute.xlu0 %329  ;;  %v332_v23 = vpop.permute.xlu1 %331 }
 0x167   : > { %v333_v15 = vsel %vm1832_vm2, %v330_v11, -inf  ;;  %v373_v16 = vsel %vm1832_vm2, %v330_v11, inf  ;;  %v334_v28 = vsel %vm1832_vm2, %v332_v23, -inf  ;;  %v374_v30 = vsel %vm1832_vm2, %v332_v23, inf }
 0x168   : > { %v335_v17 = vmax.f32 %v327_v13, %v333_v15  ;;  %v377_v19 = vmin.f32 %v371_v14, %v373_v16  ;;  %v336_v31 = vmax.f32 %v328_v21, %v334_v28  ;;  %v378_v33 = vmin.f32 %v372_v22, %v374_v30 }
 0x16a   : > { %v1895_v25 = vmax.f32 %v1849_v56, %v335_v17  ;;  %v379_v26 = vmin.f32 %v375_v18, %v377_v19  ;;  %v1905_v36 = vmax.f32 %v1854_v58, %v336_v31  ;;  %v380_v37 = vmin.f32 %v376_v32, %v378_v33 }
 0x16c   : > { %v1902_v34 = vmin.f32 %v1849_v56, %v379_v26  ;;  %v339_v39 = vrot.slane %v1895_v25, 7  ;;  %v345_v40 = vrot.slane %v1895_v25, 1  ;;  %v340_v41 = vrot.slane %v1905_v36, 7 }
 0x16d   : > { %v346_v42 = vrot.slane %v1905_v36, 1  ;;  %v1914_v44 = vmin.f32 %v1854_v58, %v380_v37 }
 0x16e   : > { %383 = vrot.lane.b32.xlu0 %v1902_v34, %s1491_s27  ;;  %v341_v45 = vsel %vm233_vm0, %v339_v39, %v340_v41  ;;  %v342_v46 = vsel %vm233_vm0, %v340_v41, %v339_v39  ;;  %v427_v61 = vrot.slane %v1902_v34, 7  ;;  %v433_v62 = vrot.slane %v1902_v34, 1 }
 0x16f   : > { %v347_v47 = vsel %vm246_vm1, %v345_v40, %v346_v42  ;;  %v348_v48 = vsel %vm246_vm1, %v346_v42, %v345_v40  ;;  %385 = vrot.lane.b32.xlu1 %v1914_v44, %s1491_s27  ;;  %v343_v49 = vsel %vm1782_vm8, %v342_v46, -inf  ;;  %v344_v50 = vsel %vm1791_vm10, %v341_v45, -inf }
 0x170   : > { %v349_v51 = vsel %vm1799_vm14, %v347_v47, -inf  ;;  %v350_v52 = vsel %vm1812_vm5, %v348_v48, -inf  ;;  %v428_v59 = vrot.slane %v1914_v44, 7  ;;  %v434_v60 = vrot.slane %v1914_v44, 1 }
 0x171   : > { %v351_v53 = vmax.f32 %v343_v49, %v349_v51  ;;  %v352_v54 = vmax.f32 %v344_v50, %v350_v52 }
 0x172   : > { %389 = vrot.lane.b32.xlu0 %v1902_v34, %s1492_s23  ;;  %v430_v63 = vsel %vm233_vm0, %v428_v59, %v427_v61  ;;  %v435_v0 = vsel %vm246_vm1, %v433_v62, %v434_v60  ;;  %v429_v9 = vsel %vm233_vm0, %v427_v61, %v428_v59  ;;  %v436_v10 = vsel %vm246_vm1, %v434_v60, %v433_v62 }
 0x173   : > { %v353_v55 = vmax.f32 %v1895_v25, %v351_v53  ;;  %v354_v57 = vmax.f32 %v1905_v36, %v352_v54  ;;  %391 = vrot.lane.b32.xlu1 %v1914_v44, %s1492_s23  ;;  %v431_v6 = vsel %vm1782_vm8, %v430_v63, inf  ;;  %v437_v7 = vsel %vm1799_vm14, %v435_v0, inf }
 0x174   : > { %v443_v12 = vmin.f32 %v431_v6, %v437_v7  ;;  %v432_v19 = vsel %vm1791_vm10, %v429_v9, inf  ;;  %v438_v20 = vsel %vm1812_vm5, %v436_v10, inf }
 0x175   : > { %v444_v32 = vmin.f32 %v432_v19, %v438_v20  ;;  %v355_v61 = vsub.f32 %v1746_v2, %v353_v55  ;;  %v356_v62 = vsub.f32 %v1752_v3, %v354_v57 }
 0x177   : > { %v357_v7 = vmax.f32 %v355_v61, 0.0 }
 0x1e0   : > { %v384_v5 = vpop.permute.xlu0 %383 }
 0x1e1   : > { %v386_v8 = vpop.permute.xlu1 %385  ;;  %v387_v13 = vsel %vm1820_vm6, %v384_v5, -inf  ;;  %v439_v14 = vsel %vm1820_vm6, %v384_v5, inf }
 0x1e2   : > { %v388_v21 = vsel %vm1820_vm6, %v386_v8, -inf  ;;  %v440_v22 = vsel %vm1820_vm6, %v386_v8, inf  ;;  %v358_v8 = vmax.f32 %v356_v62, 0.0 }
 0x1e4   : > { %v390_v11 = vpop.permute.xlu0 %389 }
 0x1e5   : > { %v393_v15 = vsel %vm1832_vm2, %v390_v11, -inf  ;;  %v441_v16 = vsel %vm1832_vm2, %v390_v11, inf  ;;  %v392_v23 = vpop.permute.xlu1 %391 }
 0x1e6   : > { %v395_v17 = vmax.f32 %v387_v13, %v393_v15  ;;  %v445_v18 = vmin.f32 %v439_v14, %v441_v16  ;;  %v394_v28 = vsel %vm1832_vm2, %v392_v23, -inf  ;;  %v442_v30 = vsel %vm1832_vm2, %v392_v23, inf }
 0x1e7   : > { %v396_v31 = vmax.f32 %v388_v21, %v394_v28  ;;  %v446_v33 = vmin.f32 %v440_v22, %v442_v30 }
 0x1e8   : > { %v397_v25 = vmax.f32 %v1902_v34, %v395_v17  ;;  %v447_v26 = vmin.f32 %v443_v12, %v445_v18 }
 0x1e9   : > { %v398_v37 = vmax.f32 %v1914_v44, %v396_v31  ;;  %v448_v39 = vmin.f32 %v444_v32, %v446_v33 }
 0x1ea   : > { %v1978_v36 = vmin.f32 %v1902_v34, %v447_v26  ;;  %v399_v40 = vrot.slane %v397_v25, 7  ;;  %v405_v41 = vrot.slane %v397_v25, 1 }
 0x1eb   : > { %v400_v42 = vrot.slane %v398_v37, 7  ;;  %v406_v45 = vrot.slane %v398_v37, 1  ;;  %v1984_v46 = vmin.f32 %v1914_v44, %v448_v39 }
 0x1ec   : > { %451 = vrot.lane.b32.xlu0 %v1978_v36, %s1491_s27  ;;  %v501_v16 = vrot.slane %v1978_v36, 1 }
 0x1ed   : > { %v401_v47 = vsel %vm233_vm0, %v399_v40, %v400_v42  ;;  %v402_v48 = vsel %vm233_vm0, %v400_v42, %v399_v40  ;;  %v407_v49 = vsel %vm246_vm1, %v405_v41, %v406_v45  ;;  %v408_v50 = vsel %vm246_vm1, %v406_v45, %v405_v41  ;;  %453 = vrot.lane.b32.xlu1 %v1984_v46, %s1491_s27 }
 0x1ee   : > { %v403_v51 = vsel %vm1782_vm8, %v402_v48, -inf  ;;  %v404_v52 = vsel %vm1791_vm10, %v401_v47, -inf  ;;  %v409_v53 = vsel %vm1799_vm14, %v407_v49, -inf  ;;  %v410_v54 = vsel %vm1812_vm5, %v408_v50, -inf }
 0x1ef   : > { %v411_v59 = vmax.f32 %v403_v51, %v409_v53  ;;  %v412_v60 = vmax.f32 %v404_v52, %v410_v54  ;;  %v496_v15 = vrot.slane %v1984_v46, 7 }
 0x1f0   : > { %457 = vrot.lane.b32.xlu0 %v1978_v36, %s1492_s23 }
 0x1f1   : > { %v413_v63 = vmax.f32 %v397_v25, %v411_v59  ;;  %v414_v0 = vmax.f32 %v398_v37, %v412_v60  ;;  %459 = vrot.lane.b32.xlu1 %v1984_v46, %s1492_s23 }
 0x1f3   : > { %v415_v5 = vsub.f32 %v1849_v56, %v413_v63  ;;  %v416_v6 = vsub.f32 %v1854_v58, %v414_v0  ;;  %v502_v56 = vrot.slane %v1984_v46, 1  ;;  %v495_v58 = vrot.slane %v1978_v36, 7 }
 0x1f5   : > { %v417_v9 = vmax.f32 %v415_v5, 0.0  ;;  %v418_v10 = vmax.f32 %v416_v6, 0.0  ;;  %v498_v17 = vsel %vm233_vm0, %v496_v15, %v495_v58  ;;  %v503_v18 = vsel %vm246_vm1, %v501_v16, %v502_v56 }
 0x1f6   : > { %v499_v20 = vsel %vm1782_vm8, %v498_v17, inf  ;;  %v505_v21 = vsel %vm1799_vm14, %v503_v18, inf  ;;  %v497_v23 = vsel %vm233_vm0, %v495_v58, %v496_v15  ;;  %v504_v25 = vsel %vm246_vm1, %v502_v56, %v501_v16 }
 0x1f7   : > { %v419_v11 = vmul.f32 %v417_v9, %v357_v7  ;;  %v420_v12 = vmul.f32 %v418_v10, %v358_v8  ;;  %v511_v28 = vmin.f32 %v499_v20, %v505_v21  ;;  %v500_v40 = vsel %vm1791_vm10, %v497_v23, inf }
 0x1f8   : > { %v506_v41 = vsel %vm1812_vm5, %v504_v25, inf }
 0x1f9   : > { %v421_v13 = vsub.f32 %v417_v9, %v419_v11  ;;  %v422_v14 = vsub.f32 %v418_v10, %v420_v12  ;;  %v512_v53 = vmin.f32 %v500_v40, %v506_v41 }
 0x1fb   : > { %v423_v2 = vmax.f32 %v421_v13, 0.0  ;;  %v424_v55 = vmax.f32 %v422_v14, 0.0 }
 0x1fd   : > { %v2012_v3 = vadd.f32 %v424_v55, %v358_v8  ;;  %v2014_v57 = vadd.f32 %v423_v2, %v357_v7 }
 0x25e   : > { %v452_v19 = vpop.permute.xlu0 %451 }
 0x25f   : > { %v454_v22 = vpop.permute.xlu1 %453  ;;  %v455_v30 = vsel %vm1820_vm6, %v452_v19, -inf  ;;  %v507_v31 = vsel %vm1820_vm6, %v452_v19, inf }
 0x260   : > { %v456_v42 = vsel %vm1820_vm6, %v454_v22, -inf  ;;  %v508_v45 = vsel %vm1820_vm6, %v454_v22, inf }
 0x262   : > { %v458_v26 = vpop.permute.xlu0 %457 }
 0x263   : > { %v461_v32 = vsel %vm1832_vm2, %v458_v26, -inf  ;;  %v509_v33 = vsel %vm1832_vm2, %v458_v26, inf  ;;  %v460_v47 = vpop.permute.xlu1 %459 }
 0x264   : > { %v463_v37 = vmax.f32 %v455_v30, %v461_v32  ;;  %v513_v39 = vmin.f32 %v507_v31, %v509_v33  ;;  %v462_v50 = vsel %vm1832_vm2, %v460_v47, -inf  ;;  %v510_v51 = vsel %vm1832_vm2, %v460_v47, inf }
 0x265   : > { %v464_v52 = vmax.f32 %v456_v42, %v462_v50  ;;  %v514_v54 = vmin.f32 %v508_v45, %v510_v51 }
 0x266   : > { %v465_v48 = vmax.f32 %v1978_v36, %v463_v37  ;;  %v515_v49 = vmin.f32 %v511_v28, %v513_v39 }
 0x267   : > { %v466_v60 = vmax.f32 %v1984_v46, %v464_v52  ;;  %v516_v61 = vmin.f32 %v512_v53, %v514_v54 }
 0x268   : > { %v2054_v59 = vmin.f32 %v1978_v36, %v515_v49  ;;  %v467_v62 = vrot.slane %v465_v48, 7  ;;  %v473_v63 = vrot.slane %v465_v48, 1 }
 0x269   : > { %v468_v0 = vrot.slane %v466_v60, 7  ;;  %v474_v5 = vrot.slane %v466_v60, 1  ;;  %v2060_v6 = vmin.f32 %v1984_v46, %v516_v61 }
 0x26a   : > { %519 = vrot.lane.b32.xlu0 %v2054_v59, %s1491_s27  ;;  %v563_v30 = vrot.slane %v2054_v59, 7  ;;  %v569_v31 = vrot.slane %v2054_v59, 1 }
 0x26b   : > { %v469_v7 = vsel %vm233_vm0, %v467_v62, %v468_v0  ;;  %v470_v8 = vsel %vm233_vm0, %v468_v0, %v467_v62  ;;  %v475_v9 = vsel %vm246_vm1, %v473_v63, %v474_v5  ;;  %v476_v10 = vsel %vm246_vm1, %v474_v5, %v473_v63  ;;  %521 = vrot.lane.b32.xlu1 %v2060_v6, %s1491_s27 }
 0x26c   : > { %v471_v11 = vsel %vm1782_vm8, %v470_v8, -inf  ;;  %v472_v12 = vsel %vm1791_vm10, %v469_v7, -inf  ;;  %v477_v13 = vsel %vm1799_vm14, %v475_v9, -inf  ;;  %v478_v14 = vsel %vm1812_vm5, %v476_v10, -inf }
 0x26d   : > { %v479_v2 = vmax.f32 %v471_v11, %v477_v13  ;;  %v480_v55 = vmax.f32 %v472_v12, %v478_v14 }
 0x26e   : > { %525 = vrot.lane.b32.xlu0 %v2054_v59, %s1492_s23 }
 0x26f   : > { %v481_v15 = vmax.f32 %v465_v48, %v479_v2  ;;  %v482_v56 = vmax.f32 %v466_v60, %v480_v55  ;;  %527 = vrot.lane.b32.xlu1 %v2060_v6, %s1492_s23 }
 0x271   : > { %v483_v58 = vsub.f32 %v1902_v34, %v481_v15  ;;  %v484_v16 = vsub.f32 %v1914_v44, %v482_v56  ;;  %v564_v34 = vrot.slane %v2060_v6, 7  ;;  %v570_v44 = vrot.slane %v2060_v6, 1 }
 0x273   : > { %v485_v17 = vmax.f32 %v483_v58, 0.0  ;;  %v486_v18 = vmax.f32 %v484_v16, 0.0  ;;  %v566_v32 = vsel %vm233_vm0, %v564_v34, %v563_v30  ;;  %v571_v33 = vsel %vm246_vm1, %v569_v31, %v570_v44 }
 0x274   : > { %v565_v40 = vsel %vm233_vm0, %v563_v30, %v564_v34  ;;  %v572_v41 = vsel %vm246_vm1, %v570_v44, %v569_v31 }
 0x275   : > { %v488_v19 = vmul.f32 %v486_v18, %v2012_v3  ;;  %v487_v20 = vmul.f32 %v485_v17, %v2014_v57  ;;  %v568_v53 = vsel %vm1791_vm10, %v565_v40, inf  ;;  %v574_v54 = vsel %vm1812_vm5, %v572_v41, inf }
 0x276   : > { %v580_v9 = vmin.f32 %v568_v53, %v574_v54 }
 0x277   : > { %v490_v21 = vsub.f32 %v486_v18, %v488_v19  ;;  %v489_v22 = vsub.f32 %v485_v17, %v487_v20 }
 0x279   : > { %v492_v23 = vmax.f32 %v490_v21, 0.0  ;;  %v491_v25 = vmax.f32 %v489_v22, 0.0 }
 0x27b   : > { %v2089_v26 = vadd.f32 %v492_v23, %v2012_v3  ;;  %v2092_v28 = vadd.f32 %v491_v25, %v2014_v57  ;;  %v567_v3 = vsel %vm1782_vm8, %v566_v32, inf  ;;  %v573_v57 = vsel %vm1799_vm14, %v571_v33, inf }
 0x27c   : > { %v579_v45 = vmin.f32 %v567_v3, %v573_v57 }
 0x2dc   : > { %v520_v37 = vpop.permute.xlu0 %519 }
 0x2dd   : > { %v522_v39 = vpop.permute.xlu1 %521  ;;  %v523_v47 = vsel %vm1820_vm6, %v520_v37, -inf  ;;  %v575_v48 = vsel %vm1820_vm6, %v520_v37, inf }
 0x2de   : > { %v524_v60 = vsel %vm1820_vm6, %v522_v39, -inf  ;;  %v576_v61 = vsel %vm1820_vm6, %v522_v39, inf }
 0x2e0   : > { %v526_v42 = vpop.permute.xlu0 %525 }
 0x2e1   : > { %v529_v49 = vsel %vm1832_vm2, %v526_v42, -inf  ;;  %v577_v50 = vsel %vm1832_vm2, %v526_v42, inf  ;;  %v528_v62 = vpop.permute.xlu1 %527 }
 0x2e2   : > { %v531_v51 = vmax.f32 %v523_v47, %v529_v49  ;;  %v581_v52 = vmin.f32 %v575_v48, %v577_v50  ;;  %v530_v5 = vsel %vm1832_vm2, %v528_v62, -inf  ;;  %v578_v7 = vsel %vm1832_vm2, %v528_v62, inf }
 0x2e3   : > { %v532_v8 = vmax.f32 %v524_v60, %v530_v5  ;;  %v582_v10 = vmin.f32 %v576_v61, %v578_v7 }
 0x2e4   : > { %v533_v63 = vmax.f32 %v2054_v59, %v531_v51  ;;  %v583_v0 = vmin.f32 %v579_v45, %v581_v52 }
 0x2e5   : > { %v534_v12 = vmax.f32 %v2060_v6, %v532_v8  ;;  %v584_v13 = vmin.f32 %v580_v9, %v582_v10 }
 0x2e6   : > { %v2132_v11 = vmin.f32 %v2054_v59, %v583_v0  ;;  %v535_v14 = vrot.slane %v533_v63, 7  ;;  %v541_v2 = vrot.slane %v533_v63, 1 }
 0x2e7   : > { %v536_v55 = vrot.slane %v534_v12, 7  ;;  %v542_v15 = vrot.slane %v534_v12, 1  ;;  %v2138_v56 = vmin.f32 %v2060_v6, %v584_v13 }
 0x2e8   : > { %587 = vrot.lane.b32.xlu0 %v2132_v11, %s1491_s27  ;;  %v631_v47 = vrot.slane %v2132_v11, 7  ;;  %v637_v48 = vrot.slane %v2132_v11, 1 }
 0x2e9   : > { %v537_v58 = vsel %vm233_vm0, %v535_v14, %v536_v55  ;;  %v538_v16 = vsel %vm233_vm0, %v536_v55, %v535_v14  ;;  %v543_v17 = vsel %vm246_vm1, %v541_v2, %v542_v15  ;;  %v544_v18 = vsel %vm246_vm1, %v542_v15, %v541_v2  ;;  %589 = vrot.lane.b32.xlu1 %v2138_v56, %s1491_s27 }
 0x2ea   : > { %v539_v19 = vsel %vm1782_vm8, %v538_v16, -inf  ;;  %v540_v20 = vsel %vm1791_vm10, %v537_v58, -inf  ;;  %v545_v21 = vsel %vm1799_vm14, %v543_v17, -inf  ;;  %v546_v22 = vsel %vm1812_vm5, %v544_v18, -inf }
 0x2eb   : > { %v547_v23 = vmax.f32 %v539_v19, %v545_v21  ;;  %v548_v25 = vmax.f32 %v540_v20, %v546_v22 }
 0x2ec   : > { %593 = vrot.lane.b32.xlu0 %v2132_v11, %s1492_s23 }
 0x2ed   : > { %v549_v34 = vmax.f32 %v533_v63, %v547_v23  ;;  %v550_v44 = vmax.f32 %v534_v12, %v548_v25  ;;  %595 = vrot.lane.b32.xlu1 %v2138_v56, %s1492_s23 }
 0x2ef   : > { %v551_v30 = vsub.f32 %v1978_v36, %v549_v34  ;;  %v552_v31 = vsub.f32 %v1984_v46, %v550_v44  ;;  %v632_v36 = vrot.slane %v2138_v56, 7  ;;  %v638_v46 = vrot.slane %v2138_v56, 1 }
 0x2f1   : > { %v553_v32 = vmax.f32 %v551_v30, 0.0  ;;  %v554_v33 = vmax.f32 %v552_v31, 0.0  ;;  %v634_v49 = vsel %vm233_vm0, %v632_v36, %v631_v47  ;;  %v639_v50 = vsel %vm246_vm1, %v637_v48, %v638_v46 }
 0x2f2   : > { %v633_v53 = vsel %vm233_vm0, %v631_v47, %v632_v36  ;;  %v640_v54 = vsel %vm246_vm1, %v638_v46, %v637_v48 }
 0x2f3   : > { %v556_v37 = vmul.f32 %v554_v33, %v2089_v26  ;;  %v555_v3 = vmul.f32 %v553_v32, %v2092_v28  ;;  %v636_v9 = vsel %vm1791_vm10, %v633_v53, inf  ;;  %v642_v10 = vsel %vm1812_vm5, %v640_v54, inf }
 0x2f4   : > { %v648_v17 = vmin.f32 %v636_v9, %v642_v10 }
 0x2f5   : > { %v558_v57 = vsub.f32 %v554_v33, %v556_v37  ;;  %v557_v39 = vsub.f32 %v553_v32, %v555_v3 }
 0x2f7   : > { %v560_v40 = vmax.f32 %v558_v57, 0.0  ;;  %v559_v41 = vmax.f32 %v557_v39, 0.0 }
 0x2f9   : > { %v2167_v42 = vadd.f32 %v560_v40, %v2089_v26  ;;  %v2170_v45 = vadd.f32 %v559_v41, %v2092_v28  ;;  %v635_v26 = vsel %vm1782_vm8, %v634_v49, inf  ;;  %v641_v28 = vsel %vm1799_vm14, %v639_v50, inf }
 0x2fa   : > { %v647_v61 = vmin.f32 %v635_v26, %v641_v28 }
 0x35a   : > { %v588_v51 = vpop.permute.xlu0 %587 }
 0x35b   : > { %v590_v52 = vpop.permute.xlu1 %589  ;;  %v591_v62 = vsel %vm1820_vm6, %v588_v51, -inf  ;;  %v643_v63 = vsel %vm1820_vm6, %v588_v51, inf }
 0x35c   : > { %v592_v12 = vsel %vm1820_vm6, %v590_v52, -inf  ;;  %v644_v13 = vsel %vm1820_vm6, %v590_v52, inf }
 0x35e   : > { %v594_v60 = vpop.permute.xlu0 %593 }
 0x35f   : > { %v597_v0 = vsel %vm1832_vm2, %v594_v60, -inf  ;;  %v645_v5 = vsel %vm1832_vm2, %v594_v60, inf  ;;  %v596_v14 = vpop.permute.xlu1 %595 }
 0x360   : > { %v599_v7 = vmax.f32 %v591_v62, %v597_v0  ;;  %v649_v8 = vmin.f32 %v643_v63, %v645_v5  ;;  %v598_v15 = vsel %vm1832_vm2, %v596_v14, -inf  ;;  %v646_v58 = vsel %vm1832_vm2, %v596_v14, inf }
 0x361   : > { %v600_v16 = vmax.f32 %v592_v12, %v598_v15  ;;  %v650_v18 = vmin.f32 %v644_v13, %v646_v58 }
 0x362   : > { %v601_v2 = vmax.f32 %v2132_v11, %v599_v7  ;;  %v651_v55 = vmin.f32 %v647_v61, %v649_v8 }
 0x363   : > { %v602_v20 = vmax.f32 %v2138_v56, %v600_v16  ;;  %v652_v21 = vmin.f32 %v648_v17, %v650_v18 }
 0x364   : > { %v2210_v19 = vmin.f32 %v2132_v11, %v651_v55  ;;  %v603_v22 = vrot.slane %v601_v2, 7  ;;  %v609_v23 = vrot.slane %v601_v2, 1 }
 0x365   : > { %v604_v25 = vrot.slane %v602_v20, 7  ;;  %v610_v34 = vrot.slane %v602_v20, 1  ;;  %v2216_v44 = vmin.f32 %v2138_v56, %v652_v21 }
 0x366   : > { %655 = vrot.lane.b32.xlu0 %v2210_v19, %s1491_s27  ;;  %v699_v62 = vrot.slane %v2210_v19, 7  ;;  %v705_v63 = vrot.slane %v2210_v19, 1 }
 0x367   : > { %v605_v30 = vsel %vm233_vm0, %v603_v22, %v604_v25  ;;  %v606_v31 = vsel %vm233_vm0, %v604_v25, %v603_v22  ;;  %v611_v32 = vsel %vm246_vm1, %v609_v23, %v610_v34  ;;  %v612_v33 = vsel %vm246_vm1, %v610_v34, %v609_v23  ;;  %657 = vrot.lane.b32.xlu1 %v2216_v44, %s1491_s27 }
 0x368   : > { %v607_v37 = vsel %vm1782_vm8, %v606_v31, -inf  ;;  %v608_v3 = vsel %vm1791_vm10, %v605_v30, -inf  ;;  %v613_v57 = vsel %vm1799_vm14, %v611_v32, -inf  ;;  %v614_v39 = vsel %vm1812_vm5, %v612_v33, -inf }
 0x369   : > { %v615_v40 = vmax.f32 %v607_v37, %v613_v57  ;;  %v616_v41 = vmax.f32 %v608_v3, %v614_v39 }
 0x36a   : > { %661 = vrot.lane.b32.xlu0 %v2210_v19, %s1492_s23 }
 0x36b   : > { %v617_v36 = vmax.f32 %v601_v2, %v615_v40  ;;  %v618_v46 = vmax.f32 %v602_v20, %v616_v41  ;;  %663 = vrot.lane.b32.xlu1 %v2216_v44, %s1492_s23 }
 0x36d   : > { %v619_v47 = vsub.f32 %v2054_v59, %v617_v36  ;;  %v620_v48 = vsub.f32 %v2060_v6, %v618_v46  ;;  %v700_v59 = vrot.slane %v2216_v44, 7  ;;  %v706_v6 = vrot.slane %v2216_v44, 1 }
 0x36f   : > { %v622_v49 = vmax.f32 %v620_v48, 0.0  ;;  %v621_v50 = vmax.f32 %v619_v47, 0.0  ;;  %v702_v0 = vsel %vm233_vm0, %v700_v59, %v699_v62  ;;  %v707_v5 = vsel %vm246_vm1, %v705_v63, %v706_v6 }
 0x370   : > { %v701_v9 = vsel %vm233_vm0, %v699_v62, %v700_v59  ;;  %v708_v10 = vsel %vm246_vm1, %v706_v6, %v705_v63 }
 0x371   : > { %v624_v51 = vmul.f32 %v622_v49, %v2167_v42  ;;  %v623_v26 = vmul.f32 %v621_v50, %v2170_v45  ;;  %v704_v17 = vsel %vm1791_vm10, %v701_v9, inf  ;;  %v710_v18 = vsel %vm1812_vm5, %v708_v10, inf }
 0x372   : > { %v716_v32 = vmin.f32 %v704_v17, %v710_v18 }
 0x373   : > { %v626_v28 = vsub.f32 %v622_v49, %v624_v51  ;;  %v625_v52 = vsub.f32 %v621_v50, %v623_v26 }
 0x375   : > { %v628_v53 = vmax.f32 %v626_v28, 0.0  ;;  %v627_v54 = vmax.f32 %v625_v52, 0.0 }
 0x377   : > { %v2245_v60 = vadd.f32 %v628_v53, %v2167_v42  ;;  %v2248_v61 = vadd.f32 %v627_v54, %v2170_v45  ;;  %v703_v42 = vsel %vm1782_vm8, %v702_v0, inf  ;;  %v709_v45 = vsel %vm1799_vm14, %v707_v5, inf }
 0x378   : > { %v715_v13 = vmin.f32 %v703_v42, %v709_v45 }
 0x3d8   : > { %v656_v7 = vpop.permute.xlu0 %655 }
 0x3d9   : > { %v658_v8 = vpop.permute.xlu1 %657  ;;  %v659_v14 = vsel %vm1820_vm6, %v656_v7, -inf  ;;  %v711_v2 = vsel %vm1820_vm6, %v656_v7, inf }
 0x3da   : > { %v660_v20 = vsel %vm1820_vm6, %v658_v8, -inf  ;;  %v712_v21 = vsel %vm1820_vm6, %v658_v8, inf }
 0x3dc   : > { %v662_v12 = vpop.permute.xlu0 %661 }
 0x3dd   : > { %v665_v55 = vsel %vm1832_vm2, %v662_v12, -inf  ;;  %v713_v15 = vsel %vm1832_vm2, %v662_v12, inf  ;;  %v664_v22 = vpop.permute.xlu1 %663 }
 0x3de   : > { %v667_v58 = vmax.f32 %v659_v14, %v665_v55  ;;  %v717_v16 = vmin.f32 %v711_v2, %v713_v15  ;;  %v666_v34 = vsel %vm1832_vm2, %v664_v22, -inf  ;;  %v714_v30 = vsel %vm1832_vm2, %v664_v22, inf }
 0x3df   : > { %v668_v31 = vmax.f32 %v660_v20, %v666_v34  ;;  %v718_v33 = vmin.f32 %v712_v21, %v714_v30 }
 0x3e0   : > { %v669_v23 = vmax.f32 %v2210_v19, %v667_v58  ;;  %v719_v25 = vmin.f32 %v715_v13, %v717_v16 }
 0x3e1   : > { %v670_v3 = vmax.f32 %v2216_v44, %v668_v31  ;;  %v720_v57 = vmin.f32 %v716_v32, %v718_v33 }
 0x3e2   : > { %v2288_v37 = vmin.f32 %v2210_v19, %v719_v25  ;;  %v671_v39 = vrot.slane %v669_v23, 7  ;;  %v677_v40 = vrot.slane %v669_v23, 1 }
 0x3e3   : > { %v672_v41 = vrot.slane %v670_v3, 7  ;;  %v678_v36 = vrot.slane %v670_v3, 1  ;;  %v2294_v46 = vmin.f32 %v2216_v44, %v720_v57 }
 0x3e4   : > { %723 = vrot.lane.b32.xlu0 %v2288_v37, %s1491_s27  ;;  %v767_v14 = vrot.slane %v2288_v37, 7  ;;  %v773_v2 = vrot.slane %v2288_v37, 1 }
 0x3e5   : > { %v673_v47 = vsel %vm233_vm0, %v671_v39, %v672_v41  ;;  %v674_v48 = vsel %vm233_vm0, %v672_v41, %v671_v39  ;;  %v679_v49 = vsel %vm246_vm1, %v677_v40, %v678_v36  ;;  %v680_v50 = vsel %vm246_vm1, %v678_v36, %v677_v40  ;;  %725 = vrot.lane.b32.xlu1 %v2294_v46, %s1491_s27 }
 0x3e6   : > { %v675_v51 = vsel %vm1782_vm8, %v674_v48, -inf  ;;  %v676_v26 = vsel %vm1791_vm10, %v673_v47, -inf  ;;  %v681_v28 = vsel %vm1799_vm14, %v679_v49, -inf  ;;  %v682_v52 = vsel %vm1812_vm5, %v680_v50, -inf }
 0x3e7   : > { %v683_v53 = vmax.f32 %v675_v51, %v681_v28  ;;  %v684_v54 = vmax.f32 %v676_v26, %v682_v52 }
 0x3e8   : > { %729 = vrot.lane.b32.xlu0 %v2288_v37, %s1492_s23 }
 0x3e9   : > { %v685_v59 = vmax.f32 %v669_v23, %v683_v53  ;;  %v686_v6 = vmax.f32 %v670_v3, %v684_v54  ;;  %731 = vrot.lane.b32.xlu1 %v2294_v46, %s1492_s23 }
 0x3eb   : > { %v688_v62 = vsub.f32 %v2138_v56, %v686_v6  ;;  %v687_v63 = vsub.f32 %v2132_v11, %v685_v59  ;;  %v768_v56 = vrot.slane %v2294_v46, 7  ;;  %v774_v11 = vrot.slane %v2294_v46, 1 }
 0x3ed   : > { %v690_v0 = vmax.f32 %v688_v62, 0.0  ;;  %v689_v5 = vmax.f32 %v687_v63, 0.0  ;;  %v770_v55 = vsel %vm233_vm0, %v768_v56, %v767_v14  ;;  %v775_v15 = vsel %vm246_vm1, %v773_v2, %v774_v11 }
 0x3ee   : > { %v769_v17 = vsel %vm233_vm0, %v767_v14, %v768_v56  ;;  %v776_v18 = vsel %vm246_vm1, %v774_v11, %v773_v2 }
 0x3ef   : > { %v692_v7 = vmul.f32 %v690_v0, %v2245_v60  ;;  %v691_v42 = vmul.f32 %v689_v5, %v2248_v61  ;;  %v772_v32 = vsel %vm1791_vm10, %v769_v17, inf  ;;  %v778_v33 = vsel %vm1812_vm5, %v776_v18, inf }
 0x3f0   : > { %v784_v49 = vmin.f32 %v772_v32, %v778_v33 }
 0x3f1   : > { %v694_v45 = vsub.f32 %v690_v0, %v692_v7  ;;  %v693_v8 = vsub.f32 %v689_v5, %v691_v42 }
 0x3f3   : > { %v696_v9 = vmax.f32 %v694_v45, 0.0  ;;  %v695_v10 = vmax.f32 %v693_v8, 0.0 }
 0x3f5   : > { %v2323_v12 = vadd.f32 %v696_v9, %v2245_v60  ;;  %v2326_v13 = vadd.f32 %v695_v10, %v2248_v61  ;;  %v771_v60 = vsel %vm1782_vm8, %v770_v55, inf  ;;  %v777_v61 = vsel %vm1799_vm14, %v775_v15, inf }
 0x3f6   : > { %v783_v21 = vmin.f32 %v771_v60, %v777_v61 }
 0x456   : > { %v724_v58 = vpop.permute.xlu0 %723 }
 0x457   : > { %v726_v16 = vpop.permute.xlu1 %725  ;;  %v727_v22 = vsel %vm1820_vm6, %v724_v58, -inf  ;;  %v779_v23 = vsel %vm1820_vm6, %v724_v58, inf }
 0x458   : > { %v728_v3 = vsel %vm1820_vm6, %v726_v16, -inf  ;;  %v780_v57 = vsel %vm1820_vm6, %v726_v16, inf }
 0x45a   : > { %v730_v20 = vpop.permute.xlu0 %729 }
 0x45b   : > { %v733_v25 = vsel %vm1832_vm2, %v730_v20, -inf  ;;  %v781_v34 = vsel %vm1832_vm2, %v730_v20, inf  ;;  %v732_v39 = vpop.permute.xlu1 %731 }
 0x45c   : > { %v735_v30 = vmax.f32 %v727_v22, %v733_v25  ;;  %v785_v31 = vmin.f32 %v779_v23, %v781_v34  ;;  %v734_v36 = vsel %vm1832_vm2, %v732_v39, -inf  ;;  %v782_v47 = vsel %vm1832_vm2, %v732_v39, inf }
 0x45d   : > { %v736_v48 = vmax.f32 %v728_v3, %v734_v36  ;;  %v786_v50 = vmin.f32 %v780_v57, %v782_v47 }
 0x45e   : > { %v737_v40 = vmax.f32 %v2288_v37, %v735_v30  ;;  %v787_v41 = vmin.f32 %v783_v21, %v785_v31 }
 0x45f   : > { %v738_v26 = vmax.f32 %v2294_v46, %v736_v48  ;;  %v788_v28 = vmin.f32 %v784_v49, %v786_v50 }
 0x460   : > { %v2366_v51 = vmin.f32 %v2288_v37, %v787_v41  ;;  %v739_v52 = vrot.slane %v737_v40, 7  ;;  %v745_v53 = vrot.slane %v737_v40, 1 }
 0x461   : > { %v740_v54 = vrot.slane %v738_v26, 7  ;;  %v746_v59 = vrot.slane %v738_v26, 1  ;;  %v2372_v6 = vmin.f32 %v2294_v46, %v788_v28 }
 0x462   : > { %791 = vrot.lane.b32.xlu0 %v2366_v51, %s1491_s27  ;;  %v835_v22 = vrot.slane %v2366_v51, 7  ;;  %v841_v23 = vrot.slane %v2366_v51, 1 }
 0x463   : > { %v741_v62 = vsel %vm233_vm0, %v739_v52, %v740_v54  ;;  %v742_v63 = vsel %vm233_vm0, %v740_v54, %v739_v52  ;;  %v747_v0 = vsel %vm246_vm1, %v745_v53, %v746_v59  ;;  %v748_v5 = vsel %vm246_vm1, %v746_v59, %v745_v53  ;;  %793 = vrot.lane.b32.xlu1 %v2372_v6, %s1491_s27 }
 0x464   : > { %v743_v7 = vsel %vm1782_vm8, %v742_v63, -inf  ;;  %v744_v42 = vsel %vm1791_vm10, %v741_v62, -inf  ;;  %v749_v45 = vsel %vm1799_vm14, %v747_v0, -inf  ;;  %v750_v8 = vsel %vm1812_vm5, %v748_v5, -inf }
 0x465   : > { %v751_v9 = vmax.f32 %v743_v7, %v749_v45  ;;  %v752_v10 = vmax.f32 %v744_v42, %v750_v8 }
 0x466   : > { %797 = vrot.lane.b32.xlu0 %v2366_v51, %s1492_s23 }
 0x467   : > { %v753_v56 = vmax.f32 %v737_v40, %v751_v9  ;;  %v754_v11 = vmax.f32 %v738_v26, %v752_v10  ;;  %799 = vrot.lane.b32.xlu1 %v2372_v6, %s1492_s23 }
 0x469   : > { %v756_v14 = vsub.f32 %v2216_v44, %v754_v11  ;;  %v755_v2 = vsub.f32 %v2210_v19, %v753_v56  ;;  %v836_v44 = vrot.slane %v2372_v6, 7  ;;  %v842_v19 = vrot.slane %v2372_v6, 1 }
 0x46b   : > { %v758_v55 = vmax.f32 %v756_v14, 0.0  ;;  %v757_v15 = vmax.f32 %v755_v2, 0.0  ;;  %v838_v25 = vsel %vm233_vm0, %v836_v44, %v835_v22  ;;  %v843_v34 = vsel %vm246_vm1, %v841_v23, %v842_v19 }
 0x46c   : > { %v837_v32 = vsel %vm233_vm0, %v835_v22, %v836_v44  ;;  %v844_v33 = vsel %vm246_vm1, %v842_v19, %v841_v23 }
 0x46d   : > { %v760_v58 = vmul.f32 %v758_v55, %v2323_v12  ;;  %v759_v60 = vmul.f32 %v757_v15, %v2326_v13  ;;  %v840_v49 = vsel %vm1791_vm10, %v837_v32, inf  ;;  %v846_v50 = vsel %vm1812_vm5, %v844_v33, inf }
 0x46e   : > { %v852_v0 = vmin.f32 %v840_v49, %v846_v50 }
 0x46f   : > { %v762_v61 = vsub.f32 %v758_v55, %v760_v58  ;;  %v761_v16 = vsub.f32 %v757_v15, %v759_v60 }
 0x471   : > { %v764_v17 = vmax.f32 %v762_v61, 0.0  ;;  %v763_v18 = vmax.f32 %v761_v16, 0.0 }
 0x473   : > { %v2401_v20 = vadd.f32 %v764_v17, %v2323_v12  ;;  %v2404_v21 = vadd.f32 %v763_v18, %v2326_v13  ;;  %v839_v12 = vsel %vm1782_vm8, %v838_v25, inf  ;;  %v845_v13 = vsel %vm1799_vm14, %v843_v34, inf }
 0x474   : > { %v851_v57 = vmin.f32 %v839_v12, %v845_v13 }
 0x4d4   : > { %v792_v30 = vpop.permute.xlu0 %791 }
 0x4d5   : > { %v794_v31 = vpop.permute.xlu1 %793  ;;  %v795_v39 = vsel %vm1820_vm6, %v792_v30, -inf  ;;  %v847_v40 = vsel %vm1820_vm6, %v792_v30, inf }
 0x4d6   : > { %v796_v26 = vsel %vm1820_vm6, %v794_v31, -inf  ;;  %v848_v28 = vsel %vm1820_vm6, %v794_v31, inf }
 0x4d8   : > { %v798_v3 = vpop.permute.xlu0 %797 }
 0x4d9   : > { %v801_v41 = vsel %vm1832_vm2, %v798_v3, -inf  ;;  %v849_v36 = vsel %vm1832_vm2, %v798_v3, inf  ;;  %v800_v52 = vpop.permute.xlu1 %799 }
 0x4da   : > { %v803_v47 = vmax.f32 %v795_v39, %v801_v41  ;;  %v853_v48 = vmin.f32 %v847_v40, %v849_v36  ;;  %v802_v59 = vsel %vm1832_vm2, %v800_v52, -inf  ;;  %v850_v62 = vsel %vm1832_vm2, %v800_v52, inf }
 0x4db   : > { %v804_v63 = vmax.f32 %v796_v26, %v802_v59  ;;  %v854_v5 = vmin.f32 %v848_v28, %v850_v62 }
 0x4dc   : > { %v805_v53 = vmax.f32 %v2366_v51, %v803_v47  ;;  %v855_v54 = vmin.f32 %v851_v57, %v853_v48 }
 0x4dd   : > { %v806_v42 = vmax.f32 %v2372_v6, %v804_v63  ;;  %v856_v45 = vmin.f32 %v852_v0, %v854_v5 }
 0x4de   : > { %v2444_v7 = vmin.f32 %v2366_v51, %v855_v54  ;;  %v807_v8 = vrot.slane %v805_v53, 7  ;;  %v813_v9 = vrot.slane %v805_v53, 1 }
 0x4df   : > { %v808_v10 = vrot.slane %v806_v42, 7  ;;  %v814_v56 = vrot.slane %v806_v42, 1  ;;  %v2450_v11 = vmin.f32 %v2372_v6, %v856_v45 }
 0x4e0   : > { %859 = vrot.lane.b32.xlu0 %v2444_v7, %s1491_s27  ;;  %v909_v40 = vrot.slane %v2444_v7, 1 }
 0x4e1   : > { %v809_v14 = vsel %vm233_vm0, %v807_v8, %v808_v10  ;;  %v810_v2 = vsel %vm233_vm0, %v808_v10, %v807_v8  ;;  %v815_v55 = vsel %vm246_vm1, %v813_v9, %v814_v56  ;;  %v816_v15 = vsel %vm246_vm1, %v814_v56, %v813_v9  ;;  %861 = vrot.lane.b32.xlu1 %v2450_v11, %s1491_s27 }
 0x4e2   : > { %v811_v58 = vsel %vm1782_vm8, %v810_v2, -inf  ;;  %v812_v60 = vsel %vm1791_vm10, %v809_v14, -inf  ;;  %v817_v61 = vsel %vm1799_vm14, %v815_v55, -inf  ;;  %v818_v16 = vsel %vm1812_vm5, %v816_v15, -inf }
 0x4e3   : > { %v819_v17 = vmax.f32 %v811_v58, %v817_v61  ;;  %v820_v18 = vmax.f32 %v812_v60, %v818_v16  ;;  %v910_v39 = vrot.slane %v2450_v11, 1 }
 0x4e4   : > { %865 = vrot.lane.b32.xlu0 %v2444_v7, %s1492_s23 }
 0x4e5   : > { %v822_v44 = vmax.f32 %v806_v42, %v820_v18  ;;  %867 = vrot.lane.b32.xlu1 %v2450_v11, %s1492_s23  ;;  %v821_v22 = vmax.f32 %v805_v53, %v819_v17  ;;  %v911_v47 = vsel %vm246_vm1, %v909_v40, %v910_v39  ;;  %v912_v50 = vsel %vm246_vm1, %v910_v39, %v909_v40 }
 0x4e6   : > { %v913_v49 = vsel %vm1799_vm14, %v911_v47, inf  ;;  %v914_v5 = vsel %vm1812_vm5, %v912_v50, inf }
 0x4e7   : > { %v824_v19 = vsub.f32 %v2294_v46, %v822_v44  ;;  %v823_v25 = vsub.f32 %v2288_v37, %v821_v22  ;;  %v904_v46 = vrot.slane %v2450_v11, 7  ;;  %v903_v37 = vrot.slane %v2444_v7, 7 }
 0x4e9   : > { %v826_v23 = vmax.f32 %v824_v19, 0.0  ;;  %v825_v34 = vmax.f32 %v823_v25, 0.0  ;;  %v906_v36 = vsel %vm233_vm0, %v904_v46, %v903_v37 }
 0x4ea   : > { %v907_v48 = vsel %vm1782_vm8, %v906_v36, inf }
 0x4eb   : > { %v828_v30 = vmul.f32 %v826_v23, %v2401_v20  ;;  %v827_v12 = vmul.f32 %v825_v34, %v2404_v21  ;;  %v919_v63 = vmin.f32 %v907_v48, %v913_v49 }
 0x4ed   : > { %v830_v13 = vsub.f32 %v826_v23, %v828_v30  ;;  %v829_v31 = vsub.f32 %v825_v34, %v827_v12 }
 0x4ef   : > { %v832_v32 = vmax.f32 %v830_v13, 0.0  ;;  %v831_v33 = vmax.f32 %v829_v31, 0.0 }
 0x4f1   : > { %v2479_v3 = vadd.f32 %v832_v32, %v2401_v20  ;;  %v2482_v57 = vadd.f32 %v831_v33, %v2404_v21  ;;  %v905_v20 = vsel %vm233_vm0, %v903_v37, %v904_v46 }
 0x4f2   : > { %v908_v28 = vsel %vm1791_vm10, %v905_v20, inf }
 0x4f3   : > { %v920_v55 = vmin.f32 %v908_v28, %v914_v5 }
 0x552   : > { %v860_v41 = vpop.permute.xlu0 %859 }
 0x553   : > { %v862_v21 = vpop.permute.xlu1 %861  ;;  %v863_v52 = vsel %vm1820_vm6, %v860_v41, -inf  ;;  %v915_v53 = vsel %vm1820_vm6, %v860_v41, inf }
 0x554   : > { %v864_v42 = vsel %vm1820_vm6, %v862_v21, -inf  ;;  %v916_v45 = vsel %vm1820_vm6, %v862_v21, inf }
 0x556   : > { %v866_v26 = vpop.permute.xlu0 %865 }
 0x557   : > { %v869_v54 = vsel %vm1832_vm2, %v866_v26, -inf  ;;  %v917_v59 = vsel %vm1832_vm2, %v866_v26, inf  ;;  %v868_v8 = vpop.permute.xlu1 %867 }
 0x558   : > { %v871_v62 = vmax.f32 %v863_v52, %v869_v54  ;;  %v921_v0 = vmin.f32 %v915_v53, %v917_v59  ;;  %v870_v56 = vsel %vm1832_vm2, %v868_v8, -inf  ;;  %v918_v14 = vsel %vm1832_vm2, %v868_v8, inf }
 0x559   : > { %v872_v2 = vmax.f32 %v864_v42, %v870_v56  ;;  %v922_v15 = vmin.f32 %v916_v45, %v918_v14 }
 0x55a   : > { %v873_v9 = vmax.f32 %v2444_v7, %v871_v62  ;;  %v923_v10 = vmin.f32 %v919_v63, %v921_v0 }
 0x55b   : > { %v874_v60 = vmax.f32 %v2450_v11, %v872_v2  ;;  %v924_v61 = vmin.f32 %v920_v55, %v922_v15 }
 0x55c   : > { %v2522_v58 = vmin.f32 %v2444_v7, %v923_v10  ;;  %v875_v16 = vrot.slane %v873_v9, 7  ;;  %v881_v17 = vrot.slane %v873_v9, 1 }
 0x55d   : > { %v876_v18 = vrot.slane %v874_v60, 7  ;;  %v882_v44 = vrot.slane %v874_v60, 1  ;;  %v2528_v19 = vmin.f32 %v2450_v11, %v924_v61 }
 0x55e   : > { %927 = vrot.lane.b32.xlu0 %v2522_v58, %s1491_s27  ;;  %v977_v53 = vrot.slane %v2522_v58, 1 }
 0x55f   : > { %v877_v22 = vsel %vm233_vm0, %v875_v16, %v876_v18  ;;  %v878_v23 = vsel %vm233_vm0, %v876_v18, %v875_v16  ;;  %v883_v25 = vsel %vm246_vm1, %v881_v17, %v882_v44  ;;  %v884_v34 = vsel %vm246_vm1, %v882_v44, %v881_v17  ;;  %929 = vrot.lane.b32.xlu1 %v2528_v19, %s1491_s27 }
 0x560   : > { %v879_v30 = vsel %vm1782_vm8, %v878_v23, -inf  ;;  %v880_v12 = vsel %vm1791_vm10, %v877_v22, -inf  ;;  %v885_v13 = vsel %vm1799_vm14, %v883_v25, -inf  ;;  %v886_v31 = vsel %vm1812_vm5, %v884_v34, -inf }
 0x561   : > { %v887_v32 = vmax.f32 %v879_v30, %v885_v13  ;;  %v888_v33 = vmax.f32 %v880_v12, %v886_v31  ;;  %v978_v52 = vrot.slane %v2528_v19, 1 }
 0x562   : > { %933 = vrot.lane.b32.xlu0 %v2522_v58, %s1492_s23 }
 0x563   : > { %v890_v46 = vmax.f32 %v874_v60, %v888_v33  ;;  %935 = vrot.lane.b32.xlu1 %v2528_v19, %s1492_s23  ;;  %v889_v37 = vmax.f32 %v873_v9, %v887_v32  ;;  %v979_v62 = vsel %vm246_vm1, %v977_v53, %v978_v52  ;;  %v980_v5 = vsel %vm246_vm1, %v978_v52, %v977_v53 }
 0x564   : > { %v981_v0 = vsel %vm1799_vm14, %v979_v62, inf  ;;  %v982_v15 = vsel %vm1812_vm5, %v980_v5, inf }
 0x565   : > { %v892_v39 = vsub.f32 %v2372_v6, %v890_v46  ;;  %v891_v41 = vsub.f32 %v2366_v51, %v889_v37  ;;  %v972_v6 = vrot.slane %v2528_v19, 7  ;;  %v971_v51 = vrot.slane %v2522_v58, 7 }
 0x567   : > { %v894_v40 = vmax.f32 %v892_v39, 0.0  ;;  %v893_v36 = vmax.f32 %v891_v41, 0.0  ;;  %v974_v59 = vsel %vm233_vm0, %v972_v6, %v971_v51 }
 0x568   : > { %v975_v63 = vsel %vm1782_vm8, %v974_v59, inf }
 0x569   : > { %v896_v47 = vmul.f32 %v894_v40, %v2479_v3  ;;  %v895_v20 = vmul.f32 %v893_v36, %v2482_v57  ;;  %v987_v2 = vmin.f32 %v975_v63, %v981_v0 }
 0x56b   : > { %v898_v21 = vsub.f32 %v894_v40, %v896_v47  ;;  %v897_v48 = vsub.f32 %v893_v36, %v895_v20 }
 0x56d   : > { %v900_v49 = vmax.f32 %v898_v21, 0.0  ;;  %v899_v50 = vmax.f32 %v897_v48, 0.0 }
 0x56f   : > { %v2557_v26 = vadd.f32 %v900_v49, %v2479_v3  ;;  %v2560_v28 = vadd.f32 %v899_v50, %v2482_v57  ;;  %v973_v3 = vsel %vm233_vm0, %v971_v51, %v972_v6 }
 0x570   : > { %v976_v45 = vsel %vm1791_vm10, %v973_v3, inf }
 0x571   : > { %v988_v25 = vmin.f32 %v976_v45, %v982_v15 }
 0x5d0   : > { %v928_v54 = vpop.permute.xlu0 %927 }
 0x5d1   : > { %v930_v57 = vpop.permute.xlu1 %929  ;;  %v931_v8 = vsel %vm1820_vm6, %v928_v54, -inf  ;;  %v983_v9 = vsel %vm1820_vm6, %v928_v54, inf }
 0x5d2   : > { %v932_v60 = vsel %vm1820_vm6, %v930_v57, -inf  ;;  %v984_v61 = vsel %vm1820_vm6, %v930_v57, inf }
 0x5d4   : > { %v934_v42 = vpop.permute.xlu0 %933 }
 0x5d5   : > { %v937_v10 = vsel %vm1832_vm2, %v934_v42, -inf  ;;  %v985_v56 = vsel %vm1832_vm2, %v934_v42, inf  ;;  %v936_v16 = vpop.permute.xlu1 %935 }
 0x5d6   : > { %v939_v14 = vmax.f32 %v931_v8, %v937_v10  ;;  %v989_v55 = vmin.f32 %v983_v9, %v985_v56  ;;  %v938_v44 = vsel %vm1832_vm2, %v936_v16, -inf  ;;  %v986_v22 = vsel %vm1832_vm2, %v936_v16, inf }
 0x5d7   : > { %v940_v23 = vmax.f32 %v932_v60, %v938_v44  ;;  %v990_v34 = vmin.f32 %v984_v61, %v986_v22 }
 0x5d8   : > { %v941_v17 = vmax.f32 %v2522_v58, %v939_v14  ;;  %v991_v18 = vmin.f32 %v987_v2, %v989_v55 }
 0x5d9   : > { %v942_v12 = vmax.f32 %v2528_v19, %v940_v23  ;;  %v992_v13 = vmin.f32 %v988_v25, %v990_v34 }
 0x5da   : > { %v993_v30 = vmin.f32 %v2522_v58, %v991_v18  ;;  %v943_v31 = vrot.slane %v941_v17, 7  ;;  %v949_v32 = vrot.slane %v941_v17, 1 }
 0x5db   : > { %v944_v33 = vrot.slane %v942_v12, 7  ;;  %v950_v46 = vrot.slane %v942_v12, 1  ;;  %v994_v39 = vmin.f32 %v2528_v19, %v992_v13 }
 0x5dc   : > { %995 = vrot.lane.b32.xlu0 %v993_v30, %s1491_s27 }
 0x5dd   : > { %v945_v37 = vsel %vm233_vm0, %v943_v31, %v944_v33  ;;  %v946_v40 = vsel %vm233_vm0, %v944_v33, %v943_v31  ;;  %v951_v41 = vsel %vm246_vm1, %v949_v32, %v950_v46  ;;  %v952_v36 = vsel %vm246_vm1, %v950_v46, %v949_v32  ;;  %997 = vrot.lane.b32.xlu1 %v994_v39, %s1491_s27 }
 0x5de   : > { %v947_v47 = vsel %vm1782_vm8, %v946_v40, -inf  ;;  %v948_v20 = vsel %vm1791_vm10, %v945_v37, -inf  ;;  %v953_v21 = vsel %vm1799_vm14, %v951_v41, -inf  ;;  %v954_v48 = vsel %vm1812_vm5, %v952_v36, -inf  ;;  %v1040_v36 = vld [vmem:[%s201_s20 + $0x8] sm:$0xff]  ;;  %s1381_s20 = scalar_lea.vmem %s1380_s19, 256 }
 0x5df   : > { %v956_v49 = vmax.f32 %v948_v20, %v954_v48  ;;  %v955_v50 = vmax.f32 %v947_v47, %v953_v21  ;;  %p1383_p10 = scmp.lt.s32.totalorder %s1381_s20, %s1375_s0 }
 0x5e0   : > { %1001 = vrot.lane.b32.xlu0 %v993_v30, %s1492_s23 }
 0x5e1   : > { %v958_v6 = vmax.f32 %v942_v12, %v956_v49  ;;  %1003 = vrot.lane.b32.xlu1 %v994_v39, %s1492_s23  ;;  %v957_v52 = vmax.f32 %v941_v17, %v955_v50  ;;  %p1384_p3 = por %p1383_p10, %p1382_p4 }
 0x5e3   : > { %v959_v51 = vsub.f32 %v2444_v7, %v957_v52  ;;  %v960_v53 = vsub.f32 %v2450_v11, %v958_v6  ;;  %p1385_p1 = pnand %p1384_p3, %p1378_p12 }
 0x5e5   : > { %v961_v54 = vmax.f32 %v959_v51, 0.0  ;;  %v962_v59 = vmax.f32 %v960_v53, 0.0 }
 0x5e7   : > { %v963_v62 = vmul.f32 %v961_v54, %v2560_v28  ;;  %v964_v3 = vmul.f32 %v962_v59, %v2557_v26 }
 0x5e9   : > { %v965_v57 = vsub.f32 %v961_v54, %v963_v62  ;;  %v966_v63 = vsub.f32 %v962_v59, %v964_v3 }
 0x5eb   : > { %v967_v0 = vmax.f32 %v965_v57, 0.0  ;;  %v968_v5 = vmax.f32 %v966_v63, 0.0 }
 0x5ed   : > { %v969_v42 = vadd.f32 %v967_v0, %v2560_v28  ;;  %v970_v45 = vadd.f32 %v968_v5, %v2557_v26 }
 0x64e   : > { %v996_v8 = vpop.permute.xlu0 %995 }
 0x64f   : > { %v998_v9 = vpop.permute.xlu1 %997  ;;  %v999_v7 = vsel %vm1820_vm6, %v996_v8, -inf }
 0x650   : > { %v1000_v2 = vsel %vm1820_vm6, %v998_v9, -inf }
 0x652   : > { %v1002_v10 = vpop.permute.xlu0 %1001 }
 0x653   : > { %v1005_v11 = vsel %vm1832_vm2, %v1002_v10, -inf  ;;  %v1004_v14 = vpop.permute.xlu1 %1003 }
 0x654   : > { %v1007_v56 = vmax.f32 %v999_v7, %v1005_v11  ;;  %v1006_v55 = vsel %vm1832_vm2, %v1004_v14, -inf }
 0x655   : > { %v1008_v15 = vmax.f32 %v1000_v2, %v1006_v55 }
 0x656   : > { %v1009_v28 = vmax.f32 %v993_v30, %v1007_v56 }
 0x657   : > { %v1010_v26 = vmax.f32 %v994_v39, %v1008_v15 }
 0x658   : > { %v1011_v60 = vrot.slane %v1009_v28, 7  ;;  %v1017_v61 = vrot.slane %v1009_v28, 1 }
 0x659   : > { %v1012_v16 = vrot.slane %v1010_v26, 7  ;;  %v1018_v17 = vrot.slane %v1010_v26, 1 }
 0x65b   : > { %v1013_v18 = vsel %vm233_vm0, %v1011_v60, %v1012_v16  ;;  %v1014_v44 = vsel %vm233_vm0, %v1012_v16, %v1011_v60  ;;  %v1019_v38 = vsel %vm246_vm1, %v1017_v61, %v1018_v17  ;;  %v1020_v43 = vsel %vm246_vm1, %v1018_v17, %v1017_v61 }
 0x65c   : > { %v1016_v22 = vsel %vm1791_vm10, %v1013_v18, -inf  ;;  %v1022_v23 = vsel %vm1812_vm5, %v1020_v43, -inf  ;;  %v1015_v25 = vsel %vm1782_vm8, %v1014_v44, -inf  ;;  %v1021_v34 = vsel %vm1799_vm14, %v1019_v38, -inf }
 0x65d   : > { %v1024_v30 = vmax.f32 %v1016_v22, %v1022_v23  ;;  %v1023_v12 = vmax.f32 %v1015_v25, %v1021_v34  ;;  %vm1063_vm0 = vcmp.eq.s32.totalorder %v1760_v4, 0  ;;  %vm1066_vm1 = vcmp.eq.s32.totalorder %v1742_v1, 1 }
 0x65e   : > { %vm1064_vm8 = vcmp.eq.s32.totalorder %v1742_v1, 0  ;;  %vm1067_vm9 = vmand %vm1063_vm0, %vm1066_vm1 }
 0x65f   : > { %v1026_v13 = vmax.f32 %v1010_v26, %v1024_v30  ;;  %v1025_v31 = vmax.f32 %v1009_v28, %v1023_v12  ;;  %vm1065_vm10 = vmand %vm1063_vm0, %vm1064_vm8 }
 0x661   : > { %v1027_v32 = vsub.f32 %v2522_v58, %v1025_v31  ;;  %v1028_v27 = vsub.f32 %v2528_v19, %v1026_v13 }
 0x663   : > { %v1029_v33 = vmax.f32 %v1027_v32, 0.0  ;;  %v1030_v46 = vmax.f32 %v1028_v27, 0.0 }
 0x665   : > { %v1031_v35 = vmul.f32 %v1029_v33, %v969_v42  ;;  %v1032_v39 = vmul.f32 %v1030_v46, %v970_v45 }
 0x667   : > { %v1033_v37 = vsub.f32 %v1029_v33, %v1031_v35  ;;  %v1034_v24 = vsub.f32 %v1030_v46, %v1032_v39 }
 0x669   : > { %v1035_v40 = vmax.f32 %v1033_v37, 0.0  ;;  %v1036_v41 = vmax.f32 %v1034_v24, 0.0 }
 0x66b   : > { %v1037_v47 = vadd.f32 %v1035_v40, %v969_v42  ;;  %v1038_v20 = vadd.f32 %v1036_v41, %v970_v45 }
 0x66d   : > { %v1053_v21 = vadd.f32 %v1038_v20, %v1037_v47  ;;  %v1041_v48 = vmul.f32 %v1039_v29, %v1037_v47  ;;  %v1042_v49 = vmul.f32 %v1040_v36, %v1038_v20 }
 0x66f   : > { %1054 = vadd.xlane.f32.xlu1 %v1053_v21  ;;  %v1043_v58 = vadd.f32 %v1042_v49, %v1041_v48 }
 0x671   : > { %1044 = vadd.xlane.f32.xlu0 %v1043_v58 }
 0x6fc   : > { %v1055_v19 = vpop.xlane.xlu1 %1054 }
 0x6fd   : > { %v1056_v50 = vrot.slane %v1055_v19, 4 }
 0x6fe   : > { %v1045_v6 = vpop.xlane.xlu0 %1044 }
 0x6ff   : > { %v1057_v52 = vadd.f32 %v1056_v50, %v1055_v19  ;;  %v1046_v51 = vrot.slane %v1045_v6, 4 }
 0x701   : > { %v1058_v53 = vrot.slane %v1057_v52, 2  ;;  %v1047_v54 = vadd.f32 %v1046_v51, %v1045_v6 }
 0x703   : > { %v1059_v59 = vadd.f32 %v1058_v53, %v1057_v52  ;;  %v1048_v62 = vrot.slane %v1047_v54, 2 }
 0x705   : > { %v1049_v3 = vadd.f32 %v1048_v62, %v1047_v54  ;;  %v1060_v57 = vrot.slane %v1059_v59, 1 }
 0x707   : > { %v1050_v63 = vrot.slane %v1049_v3, 1  ;;  %v1061_v5 = vadd.f32 %v1060_v57, %v1059_v59 }
 0x709   : > { %v1051_v0 = vadd.f32 %v1050_v63, %v1049_v3 }
 0x70b   : > { %1216 = vpush %v1051_v0 }
 0x70c   : > { %1218 = vpush %v1061_v5 }
 0x73c   : > { %s1217_s6 = spop %1216 }
 0x73d   : > { %v1070_v42 = vstv %s1217_s6  ;;  %s1219_s28 = spop %1218 }
 0x73e   : > { %v1068_v45 = vstv %s1219_s28 }
 0x73f   : > { %v1069_v8 = vsel %vm1067_vm9, %v1068_v45, 0.0 }
 0x740   : > { %v1071_v1 = vsel %vm1065_vm10, %v1070_v42, %v1069_v8 }
 0x741   : > { %1072 = vst [vmem:[%s226_s18] sm:$0xff] %v1071_v1 }
 0x742   : > { %1388 = shalt.err (!%p1385_p1)
}
 0x743   : > { %s1389_s3 = scalar_lea.hbm %s2666_s26, 128  ;;  %s1393_s5 = scalar_lea.hbm %s2726_s2, 256 }
 0x744   : > { %p1390_p8 = scmp.ne.s32.totalorder %s2666_s26, %s1389_s3  ;;  %p1394_p6 = scmp.lt.u32.totalorder %s2666_s26, %s2726_s2 }
 0x745   : > { %p1395_p0 = scmp.lt.u32.totalorder %s1393_s5, %s1389_s3  ;;  %p1397_p5 = scmp.lt.u32.totalorder %s1389_s3, %s2666_s26 }
 0x746   : > { %p1391_p13 = pnand %p1390_p8, %p2769_p7 }
 0x747   : > { %p1396_p9 = por %p1395_p0, %p1394_p6 }
 0x748   : > { %p1392_p2 = pneg %p1391_p13 }
 0x749   : > { %p1398_p11 = por %p1397_p5, %p1396_p9 }
 0x74b   : > { %p1399_p12 = pnand %p1398_p11, %p1392_p2 }
 0x74d   : > { %1402 = shalt.err (!%p1399_p12)
}
 0x74e   : > { %1224 = dma.vmem_to_hbm [thread:$0]  (%p2769_p7), %s2668_s8, 128, %s2666_s26, %s1074_s15  }
 0x74f PF: > { %s1100_s18 = sand.u32 1, %s1465_s12   ;;  %p2770_p4 = scmp.ne.s32.totalorder %s2739_s25, 0 }
 0x750   : > { %p2771_p10 = scmp.ge.s32.totalorder %s1485_s17, 2  ;;  %s1101_s28 = scalar_lea.sflag [#allocation4], %s1100_s18 }
 0x752   : > { %p1234_p3 = pnand %p2771_p10, %p2770_p4 }
 0x754   : > { %1448 = dma.done.wait (!%p1234_p3), %s1101_s28, 128  }
 0x755   : > { %1450 = vsyncadd (!%p1234_p3), %s1101_s28, 4294967168  ;;  %s21_s17 = sadd.s32 1, %s1485_s17   ;;  %s2772_s9 = smov %s1457_s10 }
 0x756   : > { %p18_p1 = scmp.ge.s32.totalorder %s21_s17, 4   ;;  %s2773_s10 = smov %s1461_s11 }
 0x757   : > { %s2774_s11 = smov %s1675_s30  ;;  %s2775_s12 = smov %s1469_s13 }
 0x758   : > { %s2776_s13 = smov %s1473_s14  ;;  %s2777_s14 = smov %s1672_s29 }
 0x759   : > { %s2778_s15 = smov %s1481_s16  ;;  %s2779_s16 = smov %s2781_s22 }
 0x75a   :  { %20 = sbr.rel (!%p18_p1) target bundleno = 12 (0xc), region = 86 }
 0x761   :  { %1106 = vsyncpa [#allocation3], 1 }
 0x762   :  { %1108 = vsyncpa [#allocation3 + $0x1], 1 }
 0x763   :  { %1109 = vsyncpa [#allocation6], 1 }
 0x764   :  { %1111 = vsyncpa [#allocation6 + $0x1], 1 }
 0x765   :  { %1112 = vsyncpa [#allocation4], 1 }
 0x766   :  { %1114 = vsyncpa [#allocation4 + $0x1], 1 }

</bundles_post_ra>
